<compile_context>
chip_gen: v7x
topology: tpu7x:2x2x1
jax: 0.10.0
libtpu: 0.0.40
codegen_flags: <defaults>
</compile_context>

<pallas_src>
import numpy as np
import jax
import jax.numpy as jnp
from jax.experimental import pallas as pl
from jax.experimental.pallas import tpu as pltpu


# ----------------------------- Pallas kernel --------------------------------
def qnet_fused_kernel(obs_ref, idx_ref, mask_ref,
                      emb_w_ref, w_obs_ref, b_mpm_ref,
                      w1_ref, b1_ref, w2_ref, b2_ref,
                      out_ref):
    # obs_ref:   [TB, HIST*N_FEAT] bf16    flattened public-obs history tile
    # idx_ref:   [TB, 1] int32             range indices
    # mask_ref:  [TB, N_ACTIONS] f32       legal-action mask (narrow)
    # emb_w_ref: [N_RANGE, MPM_UNITS] bf16 (= emb_table @ w_emb, precomputed)
    # w_obs_ref: [HIST*N_FEAT, MPM_UNITS] bf16 (= tile(w_obs)/HIST; mean folded)
    # b_mpm/b1/b2: f32 biases [1, *]
    # w1_ref:    [MPM_UNITS, N_FINAL] bf16
    # w2_ref:    [N_FINAL, N_ACTIONS] bf16
    # out_ref:   [TB, N_ACTIONS] f32
    tb = obs_ref.shape[0]
    n_range = emb_w_ref.shape[0]

    # ---- MPM stand-in ----
    # Range-embedding gather as an exact one-hot MXU matmul (0/1 exact in bf16),
    # already fused with the MPM projection via the precomputed emb_w.
    idx = idx_ref[...]                                             # [TB, 1]
    iota = jax.lax.broadcasted_iota(jnp.int32, (tb, n_range), 1)   # [TB, N_RANGE]
    onehot = (iota == idx).astype(jnp.bfloat16)

    h0 = (jnp.dot(obs_ref[...], w_obs_ref[...],
                  preferred_element_type=jnp.float32)              # mean-pool folded
          + jnp.dot(onehot, emb_w_ref[...],
                    preferred_element_type=jnp.float32)            # emb gather+proj
          + b_mpm_ref[...])
    h0 = jnp.maximum(h0, 0.0)                                      # f32 [TB, MPM]

    # ---- final_layer -> ReLU ----
    h1 = jnp.dot(h0.astype(jnp.bfloat16), w1_ref[...],
                 preferred_element_type=jnp.float32) + b1_ref[...]
    h1 = jnp.maximum(h1, 0.0)                                      # f32 [TB, N_FINAL]

    # ---- val -> legal-action mask (narrow output, narrow store) ----
    q = jnp.dot(h1.astype(jnp.bfloat16), w2_ref[...],
                preferred_element_type=jnp.float32) + b2_ref[...]
    out_ref[...] = q * mask_ref[...]                               # [TB, N_ACTIONS]


# ------------------------------ wrapper --------------------------------------
def qnet_forward(obs_flat, range_idxs, masks,
                 emb_w, w_obs_rep, b_mpm, w1, b1, w2, b2, *, tb=256):
    # NOTE: B is assumed to be a multiple of tb; an edge block would compute on
    # undefined padded rows (results are discarded on store, so keep all
    # in-kernel math strictly row-local).
    B, k_obs = obs_flat.shape
    na = w2.shape[1]
    idx2d = range_idxs.reshape(B, 1).astype(jnp.int32)

    def resident(arr):   # weight stays in VMEM across all grid steps
        nd = arr.ndim
        return pl.BlockSpec(arr.shape, lambda i, _nd=nd: (0,) * _nd)

    return pl.pallas_call(
        qnet_fused_kernel,
        out_shape=jax.ShapeDtypeStruct((B, na), jnp.float32),
        grid_spec=pltpu.PrefetchScalarGridSpec(
            num_scalar_prefetch=0,
            grid=(pl.cdiv(B, tb),),
            in_specs=[
                pl.BlockSpec((tb, k_obs), lambda i: (i, 0)),   # flattened obs
                pl.BlockSpec((tb, 1), lambda i: (i, 0)),       # range idxs
                pl.BlockSpec((tb, na), lambda i: (i, 0)),      # narrow mask
                resident(emb_w),
                resident(w_obs_rep),
                resident(b_mpm),
                resident(w1),
                resident(b1),
                resident(w2),
                resident(b2),
            ],
            out_specs=pl.BlockSpec((tb, na), lambda i: (i, 0)),
        ),
        compiler_params=pltpu.CompilerParams(
            dimension_semantics=("parallel",),   # shard batch across TCs on v7x
        ),
    )(obs_flat, idx2d, masks, emb_w, w_obs_rep, b_mpm, w1, b1, w2, b2)


# --------------------------- parameter init ---------------------------------
def _linear_init(key, fan_in, fan_out):
    # torch.nn.Linear default: U(-1/sqrt(fan_in), 1/sqrt(fan_in))
    kw, kb = jax.random.split(key)
    bound = 1.0 / np.sqrt(fan_in)
    w = jax.random.uniform(kw, (fan_in, fan_out), jnp.float32, -bound, bound)
    b = jax.random.uniform(kb, (1, fan_out), jnp.float32, -bound, bound)
    return w, b


# ----------------------------- reference (f32) -------------------------------
def qnet_reference(pub_obses, range_idxs, masks,
                   emb_table, w_mpm, b_mpm, w1, b1, w2, b2):
    pooled = jnp.mean(pub_obses, axis=1)
    emb = emb_table[range_idxs]
    feat = jnp.concatenate([pooled, emb], axis=-1)
    h0 = jnp.maximum(feat @ w_mpm + b_mpm, 0.0)     # MPM stand-in
    h1 = jnp.maximum(h0 @ w1 + b1, 0.0)             # relu(final_layer(y))
    q = h1 @ w2 + b2                                # val(y)
    return q * masks                                # * legal_action_masks


# --------------------------------- main --------------------------------------
if __name__ == "__main__":
    B, TB = 1024, 256        # batch / batch tile (4 even grid steps)
    HIST, N_FEAT = 8, 24     # public-obs history length / features per step
    EMB, N_RANGE = 8, 16     # range-idx embedding dim / number of range idxs
    MPM_UNITS = 128          # self._mpm.output_units
    N_FINAL = 128            # q_args.n_units_final
    N_ACTIONS = 8            # env_bldr.N_ACTIONS

    root = jax.random.PRNGKey(0)
    k_obs, k_idx, k_mask, k_emb, k_mpm, k_fc1, k_fc2 = jax.random.split(root, 7)

    # inputs (f32 originals for the reference)
    pub_obses = jax.random.normal(k_obs, (B, HIST, N_FEAT), jnp.float32)
    range_idxs = jax.random.randint(k_idx, (B,), 0, N_RANGE, jnp.int32)
    legal_action_masks = (
        jax.random.uniform(k_mask, (B, N_ACTIONS)) > 0.3
    ).astype(jnp.float32)

    # parameters (f32 masters)
    emb_table = jax.random.normal(k_emb, (N_RANGE, EMB), jnp.float32) * 0.1
    w_mpm, b_mpm = _linear_init(k_mpm, N_FEAT + EMB, MPM_UNITS)
    w1, b1 = _linear_init(k_fc1, MPM_UNITS, N_FINAL)      # self._final_layer
    w2, b2 = _linear_init(k_fc2, N_FINAL, N_ACTIONS)      # self._val

    # --- wrapper-side folds (layout / byte optimizations) ---
    # split MPM weight: concat([pooled, emb]) @ w_mpm == pooled@w_obs + emb@w_emb
    w_obs = w_mpm[:N_FEAT]
    w_emb = w_mpm[N_FEAT:]
    # fold mean-pool into the matmul: obs_flat @ (tile(w_obs, HIST)/HIST)
    obs_flat = pub_obses.reshape(B, HIST * N_FEAT).astype(jnp.bfloat16)
    w_obs_rep = (jnp.tile(w_obs, (HIST, 1)) / HIST).astype(jnp.bfloat16)
    # fold the embedding projection: onehot @ (emb_table @ w_emb)
    emb_w = (emb_table @ w_emb).astype(jnp.bfloat16)
    # bf16 matmul weights; biases stay f32
    w1_b = w1.astype(jnp.bfloat16)
    w2_b = w2.astype(jnp.bfloat16)

    out = qnet_forward(obs_flat, range_idxs, legal_action_masks,
                       emb_w, w_obs_rep, b_mpm, w1_b, b1, w2_b, b2, tb=TB)
    out = jax.block_until_ready(out)

    # correctness check against plain-JAX f32 reference of the module semantics
    # (tolerance loosened vs 1e-4 because matmul operands are bf16; accumulation
    #  and the bias/ReLU/mask epilogue are f32)
    ref = qnet_reference(pub_obses, range_idxs, legal_action_masks,
                         emb_table, w_mpm, b_mpm, w1, b1, w2, b2)
    np.testing.assert_allclose(np.asarray(out), np.asarray(ref),
                               rtol=1e-2, atol=1e-2)

    print("KERNEL_OK")
</pallas_src>

<mosaic_0001>
module attributes {stable_mosaic.version = 11 : i64} {
  func.func @qnet_fused_kernel(%arg0: i32, %arg1: memref<256x192xbf16, #tpu.memory_space<vmem>>, %arg2: memref<256x1xi32, #tpu.memory_space<vmem>>, %arg3: memref<256x8xf32, #tpu.memory_space<vmem>>, %arg4: memref<16x128xbf16, #tpu.memory_space<vmem>>, %arg5: memref<192x128xbf16, #tpu.memory_space<vmem>>, %arg6: memref<1x128xf32, #tpu.memory_space<vmem>>, %arg7: memref<128x128xbf16, #tpu.memory_space<vmem>>, %arg8: memref<1x128xf32, #tpu.memory_space<vmem>>, %arg9: memref<128x8xbf16, #tpu.memory_space<vmem>>, %arg10: memref<1x8xf32, #tpu.memory_space<vmem>>, %arg11: memref<256x8xf32, #tpu.memory_space<vmem>>) attributes {dimension_semantics = [#tpu.dimension_semantics<parallel>], iteration_bounds = array<i64: 4>, scalar_prefetch = 0 : i64, scratch_operands = 0 : i64, tpu.core_type = #tpu.core_type<tc>, window_params = [{transform_indices = @transform_0, window_bounds = array<i64: 256, 192>}, {transform_indices = @transform_1, window_bounds = array<i64: 256, 1>}, {transform_indices = @transform_2, window_bounds = array<i64: 256, 8>}, {pipeline_mode = #tpu.pipeline_mode<synchronous>, transform_indices = @transform_3, window_bounds = array<i64: 16, 128>}, {pipeline_mode = #tpu.pipeline_mode<synchronous>, transform_indices = @transform_4, window_bounds = array<i64: 192, 128>}, {pipeline_mode = #tpu.pipeline_mode<synchronous>, transform_indices = @transform_5, window_bounds = array<i64: 1, 128>}, {pipeline_mode = #tpu.pipeline_mode<synchronous>, transform_indices = @transform_6, window_bounds = array<i64: 128, 128>}, {pipeline_mode = #tpu.pipeline_mode<synchronous>, transform_indices = @transform_7, window_bounds = array<i64: 1, 128>}, {pipeline_mode = #tpu.pipeline_mode<synchronous>, transform_indices = @transform_8, window_bounds = array<i64: 128, 8>}, {pipeline_mode = #tpu.pipeline_mode<synchronous>, transform_indices = @transform_9, window_bounds = array<i64: 1, 8>}, {transform_indices = @transform_10, window_bounds = array<i64: 256, 8>}]} {
    %c0 = arith.constant 0 : index
    %c0_0 = arith.constant 0 : index
    %0 = vector.load %arg2[%c0, %c0_0] : memref<256x1xi32, #tpu.memory_space<vmem>>, vector<256x1xi32>
    %1 = tpu.iota {dimensions = array<i32: 1>} : vector<256x16xi32>
    %2 = vector.broadcast %0 : vector<256x1xi32> to vector<256x16xi32>
    %3 = arith.cmpi eq, %1, %2 : vector<256x16xi32>
    %4 = arith.extui %3 : vector<256x16xi1> to vector<256x16xi32>
    %5 = arith.sitofp %4 : vector<256x16xi32> to vector<256x16xf32>
    %6 = arith.truncf %5 : vector<256x16xf32> to vector<256x16xbf16>
    %c0_1 = arith.constant 0 : index
    %c0_2 = arith.constant 0 : index
    %7 = vector.load %arg1[%c0_1, %c0_2] : memref<256x192xbf16, #tpu.memory_space<vmem>>, vector<256x192xbf16>
    %c0_3 = arith.constant 0 : index
    %c0_4 = arith.constant 0 : index
    %8 = vector.load %arg5[%c0_3, %c0_4] : memref<192x128xbf16, #tpu.memory_space<vmem>>, vector<192x128xbf16>
    %cst = arith.constant dense<0.000000e+00> : vector<256x128xf32>
    %9 = tpu.matmul %7, %8, %cst {dimension_numbers = #tpu.dot_dimension_numbers<[1], [0], [0], [1], [0, 0, 1, 1], [], []>} : vector<256x192xbf16>, vector<192x128xbf16>, vector<256x128xf32> -> vector<256x128xf32>
    %c0_5 = arith.constant 0 : index
    %c0_6 = arith.constant 0 : index
    %10 = vector.load %arg4[%c0_5, %c0_6] : memref<16x128xbf16, #tpu.memory_space<vmem>>, vector<16x128xbf16>
    %cst_7 = arith.constant dense<0.000000e+00> : vector<256x128xf32>
    %11 = tpu.matmul %6, %10, %cst_7 {dimension_numbers = #tpu.dot_dimension_numbers<[1], [0], [0], [1], [0, 0, 1, 1], [], []>} : vector<256x16xbf16>, vector<16x128xbf16>, vector<256x128xf32> -> vector<256x128xf32>
    %12 = arith.addf %9, %11 : vector<256x128xf32>
    %c0_8 = arith.constant 0 : index
    %c0_9 = arith.constant 0 : index
    %13 = vector.load %arg6[%c0_8, %c0_9] : memref<1x128xf32, #tpu.memory_space<vmem>>, vector<1x128xf32>
    %14 = vector.broadcast %13 : vector<1x128xf32> to vector<256x128xf32>
    %15 = arith.addf %12, %14 : vector<256x128xf32>
    %cst_10 = arith.constant 0.000000e+00 : f32
    %16 = vector.broadcast %cst_10 : f32 to vector<256x128xf32>
    %17 = arith.maximumf %15, %16 : vector<256x128xf32>
    %18 = arith.truncf %17 : vector<256x128xf32> to vector<256x128xbf16>
    %c0_11 = arith.constant 0 : index
    %c0_12 = arith.constant 0 : index
    %19 = vector.load %arg7[%c0_11, %c0_12] : memref<128x128xbf16, #tpu.memory_space<vmem>>, vector<128x128xbf16>
    %cst_13 = arith.constant dense<0.000000e+00> : vector<256x128xf32>
    %20 = tpu.matmul %18, %19, %cst_13 {dimension_numbers = #tpu.dot_dimension_numbers<[1], [0], [0], [1], [0, 0, 1, 1], [], []>} : vector<256x128xbf16>, vector<128x128xbf16>, vector<256x128xf32> -> vector<256x128xf32>
    %c0_14 = arith.constant 0 : index
    %c0_15 = arith.constant 0 : index
    %21 = vector.load %arg8[%c0_14, %c0_15] : memref<1x128xf32, #tpu.memory_space<vmem>>, vector<1x128xf32>
    %22 = vector.broadcast %21 : vector<1x128xf32> to vector<256x128xf32>
    %23 = arith.addf %20, %22 : vector<256x128xf32>
    %cst_16 = arith.constant 0.000000e+00 : f32
    %24 = vector.broadcast %cst_16 : f32 to vector<256x128xf32>
    %25 = arith.maximumf %23, %24 : vector<256x128xf32>
    %26 = arith.truncf %25 : vector<256x128xf32> to vector<256x128xbf16>
    %c0_17 = arith.constant 0 : index
    %c0_18 = arith.constant 0 : index
    %27 = vector.load %arg9[%c0_17, %c0_18] : memref<128x8xbf16, #tpu.memory_space<vmem>>, vector<128x8xbf16>
    %cst_19 = arith.constant dense<0.000000e+00> : vector<256x8xf32>
    %28 = tpu.matmul %26, %27, %cst_19 {dimension_numbers = #tpu.dot_dimension_numbers<[1], [0], [0], [1], [0, 0, 1, 1], [], []>} : vector<256x128xbf16>, vector<128x8xbf16>, vector<256x8xf32> -> vector<256x8xf32>
    %c0_20 = arith.constant 0 : index
    %c0_21 = arith.constant 0 : index
    %29 = vector.load %arg10[%c0_20, %c0_21] : memref<1x8xf32, #tpu.memory_space<vmem>>, vector<1x8xf32>
    %30 = vector.broadcast %29 : vector<1x8xf32> to vector<256x8xf32>
    %31 = arith.addf %28, %30 : vector<256x8xf32>
    %c0_22 = arith.constant 0 : index
    %c0_23 = arith.constant 0 : index
    %32 = vector.load %arg3[%c0_22, %c0_23] : memref<256x8xf32, #tpu.memory_space<vmem>>, vector<256x8xf32>
    %33 = arith.mulf %31, %32 : vector<256x8xf32>
    %c0_24 = arith.constant 0 : index
    %c0_25 = arith.constant 0 : index
    %34 = vector.load %arg11[%c0_24, %c0_25] : memref<256x8xf32, #tpu.memory_space<vmem>>, vector<256x8xf32>
    tpu.vector_store %arg11[%c0_24, %c0_25], %33 {strides = array<i32>} : memref<256x8xf32, #tpu.memory_space<vmem>>, vector<256x8xf32>,
    return
  }
  func.func @transform_0(%arg0: i32) -> (i32, i32) {
    %c0_i32 = arith.constant 0 : i32
    %c0_i32_0 = arith.constant 0 : i32
    return %arg0, %c0_i32 : i32, i32
  }
  func.func @transform_1(%arg0: i32) -> (i32, i32) {
    %c0_i32 = arith.constant 0 : i32
    %c0_i32_0 = arith.constant 0 : i32
    return %arg0, %c0_i32 : i32, i32
  }
  func.func @transform_2(%arg0: i32) -> (i32, i32) {
    %c0_i32 = arith.constant 0 : i32
    %c0_i32_0 = arith.constant 0 : i32
    return %arg0, %c0_i32 : i32, i32
  }
  func.func @transform_3(%arg0: i32) -> (i32, i32) {
    %c0_i32 = arith.constant 0 : i32
    %c0_i32_0 = arith.constant 0 : i32
    %c0_i32_1 = arith.constant 0 : i32
    return %c0_i32, %c0_i32_0 : i32, i32
  }
  func.func @transform_4(%arg0: i32) -> (i32, i32) {
    %c0_i32 = arith.constant 0 : i32
    %c0_i32_0 = arith.constant 0 : i32
    %c0_i32_1 = arith.constant 0 : i32
    return %c0_i32, %c0_i32_0 : i32, i32
  }
  func.func @transform_5(%arg0: i32) -> (i32, i32) {
    %c0_i32 = arith.constant 0 : i32
    %c0_i32_0 = arith.constant 0 : i32
    %c0_i32_1 = arith.constant 0 : i32
    return %c0_i32, %c0_i32_0 : i32, i32
  }
  func.func @transform_6(%arg0: i32) -> (i32, i32) {
    %c0_i32 = arith.constant 0 : i32
    %c0_i32_0 = arith.constant 0 : i32
    %c0_i32_1 = arith.constant 0 : i32
    return %c0_i32, %c0_i32_0 : i32, i32
  }
  func.func @transform_7(%arg0: i32) -> (i32, i32) {
    %c0_i32 = arith.constant 0 : i32
    %c0_i32_0 = arith.constant 0 : i32
    %c0_i32_1 = arith.constant 0 : i32
    return %c0_i32, %c0_i32_0 : i32, i32
  }
  func.func @transform_8(%arg0: i32) -> (i32, i32) {
    %c0_i32 = arith.constant 0 : i32
    %c0_i32_0 = arith.constant 0 : i32
    %c0_i32_1 = arith.constant 0 : i32
    return %c0_i32, %c0_i32_0 : i32, i32
  }
  func.func @transform_9(%arg0: i32) -> (i32, i32) {
    %c0_i32 = arith.constant 0 : i32
    %c0_i32_0 = arith.constant 0 : i32
    %c0_i32_1 = arith.constant 0 : i32
    return %c0_i32, %c0_i32_0 : i32, i32
  }
  func.func @transform_10(%arg0: i32) -> (i32, i32) {
    %c0_i32 = arith.constant 0 : i32
    %c0_i32_0 = arith.constant 0 : i32
    return %arg0, %c0_i32 : i32, i32
  }
}

</mosaic_0001>

<bundles_post_ra>
// kernel: tpu_custom_call.1
= control target key start
LH: loop header
LB: loop body
LE: loop exit
PB: predicated region body
PF: predicated region fallthrough
CT: control target
= control target key end

     0   :  { %s2625_s13 = smov 0   ;;  %s3204_s0 = inlined_call_operand.vmem [shape: bf16[1024,192], index: 0, kind: input, shape index: {}]   ;;  %s3205_s1 = inlined_call_operand.vmem [shape: s32[1024,1], index: 1, kind: input, shape index: {}]   ;;  %s3206_s2 = inlined_call_operand.vmem [shape: f32[1024,8], index: 2, kind: input, shape index: {}]   ;;  %s3207_s3 = inlined_call_operand.vmem [shape: bf16[16,128], index: 3, kind: input, shape index: {}]   ;;  %s3208_s4 = inlined_call_operand.vmem [shape: bf16[192,128], index: 4, kind: input, shape index: {}]   ;;  %s3209_s5 = inlined_call_operand.vmem [shape: f32[1,128], index: 5, kind: input, shape index: {}]   ;;  %s3210_s6 = inlined_call_operand.vmem [shape: bf16[128,128], index: 6, kind: input, shape index: {}]   ;;  %s3211_s7 = inlined_call_operand.vmem [shape: f32[1,128], index: 7, kind: input, shape index: {}]   ;;  %s3212_s8 = inlined_call_operand.vmem [shape: bf16[128,8], index: 8, kind: input, shape index: {}]   ;;  %s3213_s9 = inlined_call_operand.vmem [shape: f32[1,8], index: 9, kind: input, shape index: {}]   ;;  %s3214_s10 = inlined_call_operand.vmem [shape: f32[1024,8], index: 10, kind: output, shape index: {}]  }
   0x1 LB: > { %s2129_s14 = sadd.s32 4294967295, %s2566_s13   ;;  %p2133_p0 = scmp.ge.s32.totalorder %s2566_s13, 1  ;;  %s2566_s13 = sphi %s2625_s13, %s20_s13  }
   0x2   : > { %p336_p1 = scmp.lt.s32.totalorder %s2566_s13, 5 }
   0x4   : > { %p337_p2 = pnand %p2133_p0, %p336_p1 }
   0x5   : > { %s2134_s15 = sshll.u32 (!%p337_p2), %s2129_s14, 5  ;;  %v2568_v0 = vmov (!%p337_p2), 0   ;;  %v2483_v9 = vld [vmem:[%s3207_s3] sm:$0xff] (!%p337_p2)   ;;  %v443_v34 = vlaneseq (!%p337_p2)  ;;  %vm717_vm4 = vcmask (!%p337_p2), 130048   ;;  %v2569_v40 = vmov (!%p337_p2), 0.0   ;;  %v2485_v53 = vld [vmem:[%s3208_s4 + $0x8] sm:$0xff] (!%p337_p2)  }
   0x6   : > { %340 = sbr.rel (%p337_p2) target bundleno = 986 (0x3da), region = 60  ;;  %2482 = vset.pattern.permute.xlu1 (!%p337_p2), %v2568_v0  ;;  %2481 = vset.pattern.permute.xlu0 (!%p337_p2), %v2568_v0  ;;  %p386_p3 = scmp.lt.s32.totalorder (!%p337_p2), %s2134_s15, 127  ;;  %v2484_v47 = vld [vmem:[%s3208_s4] sm:$0xff] (!%p337_p2)   ;;  %v2486_v59 = vld [vmem:[%s3208_s4 + $0x10] sm:$0xff] (!%p337_p2)  }
   0x7   : > { %2469 = vmatprep.subr.bf16.mxu1 (!%p337_p2), %v2483_v9  ;;  %2339 = vmatprep.subr.bf16.mxu0 (!%p337_p2), %v2483_v9  ;;  %v2685_v35 = vand.u32 (!%p337_p2), 127, %v443_v34 }
   0x8   : > { %2470 = vmatpush3.bf16.msra.mxu1 (!%p337_p2), %v2483_v9  ;;  %2340 = vmatpush3.bf16.msra.mxu0 (!%p337_p2), %v2483_v9 }
   0x9   : > { %1192 = vmatprep.subr.bf16.mxu1 (!%p337_p2), %v2568_v0 }
   0xd   : > { %s3216_s15 = smov (!%p386_p3, %s2134_s15), 127 }
   0xe   : > { %s2635_s16 = sshll.u32 %s3216_s15, 3 }
   0xf   : > { %s2641_s19 = scalar_lea.vmem %s3205_s1, %s2635_s16  ;;  %s2681_s24 = scalar_lea.vmem %s3204_s0, %s2635_s16 }
  0x10   : > { %v429_v1 = vld [vmem:[%s2641_s19 + $0x90] sm:$0xff]  ;;  %v427_v2 = vld [vmem:[%s2641_s19 + $0x80] sm:$0xff]  ;;  %v430_v3 = vld [vmem:[%s2641_s19 + $0x98] sm:$0xff]  ;;  %s3060_s15 = scalar_lea.vmem %s3206_s2, %s2635_s16  ;;  %s3074_s21 = scalar_lea.vmem %s3214_s10, %s2635_s16 }
  0x11   : > { %500 = vperm.xlu1 %2482, %v429_v1   ;;  %494 = vperm.xlu0 %2481, %v427_v2   ;;  %v428_v4 = vld [vmem:[%s2641_s19 + $0x88] sm:$0xff]  ;;  %v431_v6 = vld [vmem:[%s2641_s19 + $0xa0] sm:$0xff]  ;;  %v434_v7 = vld [vmem:[%s2641_s19 + $0xb8] sm:$0xff] }
  0x12   : > { %v432_v5 = vld [vmem:[%s2641_s19 + $0xa8] sm:$0xff]  ;;  %v433_v8 = vld [vmem:[%s2641_s19 + $0xb0] sm:$0xff]  ;;  %v435_v11 = vld [vmem:[%s2641_s19 + $0xc0] sm:$0xff] }
  0x13   : > { %v436_v10 = vld [vmem:[%s2641_s19 + $0xc8] sm:$0xff]  ;;  %v438_v12 = vld [vmem:[%s2641_s19 + $0xd8] sm:$0xff]  ;;  %v437_v13 = vld [vmem:[%s2641_s19 + $0xd0] sm:$0xff] }
  0x14   : > { %v440_v14 = vld [vmem:[%s2641_s19 + $0xe8] sm:$0xff]  ;;  %v439_v15 = vld [vmem:[%s2641_s19 + $0xe0] sm:$0xff]  ;;  %v442_v16 = vld [vmem:[%s2641_s19 + $0xf8] sm:$0xff] }
  0x15   : > { %503 = vperm.xlu1 %2482, %v430_v3   ;;  %497 = vperm.xlu0 %2481, %v428_v4   ;;  %v441_v17 = vld [vmem:[%s2641_s19 + $0xf0] sm:$0xff]  ;;  %v412_v18 = vld [vmem:[%s2641_s19 + $0x8] sm:$0xff]  ;;  %v411_v19 = vld [vmem:[%s2641_s19] sm:$0xff] }
  0x16   : > { %v414_v20 = vld [vmem:[%s2641_s19 + $0x18] sm:$0xff]  ;;  %v413_v21 = vld [vmem:[%s2641_s19 + $0x10] sm:$0xff]  ;;  %v416_v22 = vld [vmem:[%s2641_s19 + $0x28] sm:$0xff] }
  0x17   : > { %v415_v23 = vld [vmem:[%s2641_s19 + $0x20] sm:$0xff]  ;;  %v418_v24 = vld [vmem:[%s2641_s19 + $0x38] sm:$0xff]  ;;  %v417_v25 = vld [vmem:[%s2641_s19 + $0x30] sm:$0xff] }
  0x18   : > { %v420_v26 = vld [vmem:[%s2641_s19 + $0x48] sm:$0xff]  ;;  %v419_v27 = vld [vmem:[%s2641_s19 + $0x40] sm:$0xff]  ;;  %v422_v28 = vld [vmem:[%s2641_s19 + $0x58] sm:$0xff] }
  0x19   : > { %509 = vperm.xlu1 %2482, %v432_v5   ;;  %506 = vperm.xlu0 %2481, %v431_v6   ;;  %v421_v29 = vld [vmem:[%s2641_s19 + $0x50] sm:$0xff]  ;;  %v424_v30 = vld [vmem:[%s2641_s19 + $0x68] sm:$0xff]  ;;  %v423_v31 = vld [vmem:[%s2641_s19 + $0x60] sm:$0xff] }
  0x1a   : > { %v426_v32 = vld [vmem:[%s2641_s19 + $0x78] sm:$0xff]  ;;  %v425_v33 = vld [vmem:[%s2641_s19 + $0x70] sm:$0xff] }
  0x1b   : > { %v2487_v2 = vld [vmem:[%s3208_s4 + $0x18] sm:$0xff]  }
  0x1d   : > { %515 = vperm.xlu1 %2482, %v434_v7   ;;  %512 = vperm.xlu0 %2481, %v433_v8   ;;  %v2488_v8 = vld [vmem:[%s3208_s4 + $0x20] sm:$0xff]  }
  0x21   : > { %521 = vperm.xlu1 %2482, %v436_v10   ;;  %518 = vperm.xlu0 %2481, %v435_v11  }
  0x25   : > { %527 = vperm.xlu1 %2482, %v438_v12   ;;  %524 = vperm.xlu0 %2481, %v437_v13  }
  0x29   : > { %533 = vperm.xlu1 %2482, %v440_v14   ;;  %530 = vperm.xlu0 %2481, %v439_v15   ;;  %v2489_v14 = vld [vmem:[%s3208_s4 + $0x28] sm:$0xff]  }
  0x2d   : > { %539 = vperm.xlu1 %2482, %v442_v16   ;;  %536 = vperm.xlu0 %2481, %v441_v17  }
  0x31   : > { %449 = vperm.xlu1 %2482, %v412_v18   ;;  %446 = vperm.xlu0 %2481, %v411_v19  }
  0x35   : > { %455 = vperm.xlu1 %2482, %v414_v20   ;;  %452 = vperm.xlu0 %2481, %v413_v21   ;;  %v2490_v20 = vld [vmem:[%s3208_s4 + $0x30] sm:$0xff]   ;;  %v2498_v21 = vld [vmem:[%s2681_s24 + $0x4] ss:$8 sps:$4 sm:$0xff]  }
  0x39   : > { %461 = vperm.xlu1 %2482, %v416_v22   ;;  %458 = vperm.xlu0 %2481, %v415_v23  }
  0x3d   : > { %467 = vperm.xlu1 %2482, %v418_v24   ;;  %464 = vperm.xlu0 %2481, %v417_v25  }
  0x41   : > { %473 = vperm.xlu1 %2482, %v420_v26   ;;  %470 = vperm.xlu0 %2481, %v419_v27   ;;  %v2491_v27 = vld [vmem:[%s3208_s4 + $0x38] sm:$0xff]  }
  0x45   : > { %479 = vperm.xlu1 %2482, %v422_v28   ;;  %476 = vperm.xlu0 %2481, %v421_v29  }
  0x49   : > { %485 = vperm.xlu1 %2482, %v424_v30   ;;  %482 = vperm.xlu0 %2481, %v423_v31  }
  0x4d   : > { %491 = vperm.xlu1 %2482, %v426_v32   ;;  %488 = vperm.xlu0 %2481, %v425_v33   ;;  %v2492_v33 = vld [vmem:[%s3208_s4 + $0x40] sm:$0xff]  }
  0x90   : > { %v501_v36 = vpop.permute.xlu1 %500  ;;  %v495_v37 = vpop.permute.xlu0 %494 }
  0x91   : > { %vm559_vm0 = vcmp.eq.s32.totalorder %v2685_v35, %v501_v36  ;;  %vm557_vm1 = vcmp.eq.s32.totalorder %v2685_v35, %v495_v37 }
  0x92   : > { %v2161_v41 = vsel %vm559_vm0, 1.0, %v2569_v40  ;;  %v2159_v42 = vsel %vm557_vm1, 1.0, %v2569_v40  ;;  %vm1143_vm1 = vcmask 523264  }
  0x94   : > { %v504_v38 = vpop.permute.xlu1 %503  ;;  %v498_v39 = vpop.permute.xlu0 %497 }
  0x95   : > { %vm560_vm2 = vcmp.eq.s32.totalorder %v2685_v35, %v504_v38  ;;  %vm558_vm3 = vcmp.eq.s32.totalorder %v2685_v35, %v498_v39 }
  0x96   : > { %v2162_v43 = vsel %vm560_vm2, 1.0, %v2569_v40  ;;  %v2160_v44 = vsel %vm558_vm3, 1.0, %v2569_v40 }
  0x97   : > { %v646_v45 = vpack.c.bf16 %v2162_v43, %v2161_v41  ;;  %v645_v46 = vpack.c.bf16 %v2160_v44, %v2159_v42  ;;  %v2493_v41 = vld [vmem:[%s3208_s4 + $0x48] sm:$0xff]  }
  0x98   : > { %v510_v48 = vpop.permute.xlu1 %509  ;;  %v507_v49 = vpop.permute.xlu0 %506 }
  0x99   : > { %vm562_vm5 = vcmp.eq.s32.totalorder %v2685_v35, %v510_v48  ;;  %vm561_vm6 = vcmp.eq.s32.totalorder %v2685_v35, %v507_v49  ;;  %2357 = vmatprep.mubr.msk.bf16.mxu1 %vm717_vm4, %v645_v46 }
  0x9a   : > { %v2164_v50 = vsel %vm562_vm5, 1.0, %v2569_v40  ;;  %v2163_v51 = vsel %vm561_vm6, 1.0, %v2569_v40  ;;  %2358 = vmatmul.mubr.msk.bf16.vlgmr.msra.gmra.mrb[0].mxu1 %vm717_vm4, %v646_v45 }
  0x9b   : > { %v647_v52 = vpack.c.bf16 %v2164_v50, %v2163_v51  ;;  %1193 = vmatpush1.bf16.msra.mxu1 %v2484_v47  ;;  %v2494_v47 = vld [vmem:[%s3208_s4 + $0x50] sm:$0xff]  }
  0x9c   : > { %v516_v54 = vpop.permute.xlu1 %515  ;;  %v513_v55 = vpop.permute.xlu0 %512  ;;  %1194 = vmatprep.subr.bf16.mxu1 %v2568_v0 }
  0x9d   : > { %vm564_vm7 = vcmp.eq.s32.totalorder %v2685_v35, %v516_v54  ;;  %vm563_vm8 = vcmp.eq.s32.totalorder %v2685_v35, %v513_v55  ;;  %2361 = vmatprep.mubr.msk.bf16.mxu1 %vm717_vm4, %v647_v52 }
  0x9e   : > { %v2166_v56 = vsel %vm564_vm7, 1.0, %v2569_v40  ;;  %v2165_v57 = vsel %vm563_vm8, 1.0, %v2569_v40 }
  0x9f   : > { %v648_v58 = vpack.c.bf16 %v2166_v56, %v2165_v57  ;;  %1195 = vmatpush1.bf16.msra.mxu1 %v2485_v53  ;;  %v2495_v53 = vld [vmem:[%s3208_s4 + $0x58] sm:$0xff]  }
  0xa0   : > { %v522_v60 = vpop.permute.xlu1 %521  ;;  %v519_v61 = vpop.permute.xlu0 %518  ;;  %1196 = vmatprep.subr.bf16.mxu1 %v2568_v0 }
  0xa1   : > { %vm566_vm9 = vcmp.eq.s32.totalorder %v2685_v35, %v522_v60  ;;  %vm565_vm10 = vcmp.eq.s32.totalorder %v2685_v35, %v519_v61  ;;  %v2499_v60 = vld [vmem:[%s2681_s24 + $0x14] ss:$8 sps:$4 sm:$0xff]  }
  0xa2   : > { %v2168_v62 = vsel %vm566_vm9, 1.0, %v2569_v40  ;;  %v2167_v63 = vsel %vm565_vm10, 1.0, %v2569_v40  ;;  %2362 = vmatmul.mubr.msk.bf16.gmra.mrb[4].mxu1 %vm717_vm4, %v648_v58  ;;  %v2496_v58 = vld [vmem:[%s2681_s24] ss:$8 sps:$4 sm:$0xff]  }
  0xa3   : > { %v649_v1 = vpack.c.bf16 %v2168_v62, %v2167_v63  ;;  %1197 = vmatpush1.bf16.msra.mxu1 %v2486_v59 }
  0xa4   : > { %v528_v3 = vpop.permute.xlu1 %527  ;;  %v525_v4 = vpop.permute.xlu0 %524  ;;  %1198 = vmatprep.subr.bf16.mxu1 %v2568_v0 }
  0xa5   : > { %vm568_vm11 = vcmp.eq.s32.totalorder %v2685_v35, %v528_v3  ;;  %vm567_vm12 = vcmp.eq.s32.totalorder %v2685_v35, %v525_v4  ;;  %2365 = vmatprep.mubr.msk.bf16.mxu1 %vm717_vm4, %v649_v1 }
  0xa6   : > { %v2170_v5 = vsel %vm568_vm11, 1.0, %v2569_v40  ;;  %v2169_v6 = vsel %vm567_vm12, 1.0, %v2569_v40 }
  0xa7   : > { %v650_v7 = vpack.c.bf16 %v2170_v5, %v2169_v6  ;;  %1199 = vmatpush1.bf16.msra.mxu1 %v2487_v2  ;;  %v2501_v6 = vld [vmem:[%s2681_s24 + $0x10] ss:$8 sps:$4 sm:$0xff]  }
  0xa8   : > { %v534_v9 = vpop.permute.xlu1 %533  ;;  %v531_v10 = vpop.permute.xlu0 %530  ;;  %1200 = vmatprep.subr.bf16.mxu1 %v2568_v0 }
  0xa9   : > { %vm570_vm13 = vcmp.eq.s32.totalorder %v2685_v35, %v534_v9  ;;  %vm569_vm14 = vcmp.eq.s32.totalorder %v2685_v35, %v531_v10  ;;  %v2504_v9 = vld [vmem:[%s2681_s24 + $0x20] ss:$8 sps:$4 sm:$0xff]   ;;  %v2507_v10 = vld [vmem:[%s2681_s24 + $0x30] ss:$8 sps:$4 sm:$0xff]  }
  0xaa   : > { %v2172_v11 = vsel %vm570_vm13, 1.0, %v2569_v40  ;;  %v2171_v12 = vsel %vm569_vm14, 1.0, %v2569_v40  ;;  %2366 = vmatmul.mubr.msk.bf16.gmra.mrb[8].mxu1 %vm717_vm4, %v650_v7 }
  0xab   : > { %v651_v13 = vpack.c.bf16 %v2172_v11, %v2171_v12  ;;  %1201 = vmatpush1.bf16.msra.mxu1 %v2488_v8  ;;  %v2502_v8 = vld [vmem:[%s2681_s24 + $0x24] ss:$8 sps:$4 sm:$0xff]   ;;  %v2510_v11 = vld [vmem:[%s2681_s24 + $0x40] ss:$8 sps:$4 sm:$0xff]   ;;  %v2511_v12 = vld [vmem:[%s2681_s24 + $0x54] ss:$8 sps:$4 sm:$0xff]  }
  0xac   : > { %v540_v15 = vpop.permute.xlu1 %539  ;;  %v537_v16 = vpop.permute.xlu0 %536  ;;  %1202 = vmatprep.subr.bf16.mxu1 %v2568_v0 }
  0xad   : > { %vm572_vm15 = vcmp.eq.s32.totalorder %v2685_v35, %v540_v15  ;;  %vm571_vm0 = vcmp.eq.s32.totalorder %v2685_v35, %v537_v16  ;;  %2369 = vmatprep.mubr.msk.bf16.mxu1 %vm717_vm4, %v651_v13  ;;  %v2513_v13 = vld [vmem:[%s2681_s24 + $0x50] ss:$8 sps:$4 sm:$0xff]   ;;  %v2516_v15 = vld [vmem:[%s2681_s24 + $0x60] ss:$8 sps:$4 sm:$0xff]   ;;  %v2517_v16 = vld [vmem:[%s2681_s24 + $0x74] ss:$8 sps:$4 sm:$0xff]  }
  0xae   : > { %v2174_v17 = vsel %vm572_vm15, 1.0, %v2569_v40  ;;  %v2173_v18 = vsel %vm571_vm0, 1.0, %v2569_v40 }
  0xaf   : > { %v652_v19 = vpack.c.bf16 %v2174_v17, %v2173_v18  ;;  %1203 = vmatpush1.bf16.msra.mxu1 %v2489_v14  ;;  %v2514_v14 = vld [vmem:[%s2681_s24 + $0x64] ss:$8 sps:$4 sm:$0xff]   ;;  %v2519_v17 = vld [vmem:[%s2681_s24 + $0x70] ss:$8 sps:$4 sm:$0xff]  }
  0xb0   : > { %v450_v22 = vpop.permute.xlu1 %449  ;;  %v447_v23 = vpop.permute.xlu0 %446  ;;  %1204 = vmatprep.subr.bf16.mxu1 %v2568_v0  ;;  %v2520_v18 = vld [vmem:[%s2681_s24 + $0x84] ss:$8 sps:$4 sm:$0xff]  }
  0xb1   : > { %vm542_vm2 = vcmp.eq.s32.totalorder %v2685_v35, %v450_v22  ;;  %vm541_vm3 = vcmp.eq.s32.totalorder %v2685_v35, %v447_v23  ;;  %v2544_v22 = vld [vmem:[%s3210_s6] sm:$0xff]  }
  0xb2   : > { %v2144_v24 = vsel %vm542_vm2, 1.0, %v2569_v40  ;;  %v2143_v25 = vsel %vm541_vm3, 1.0, %v2569_v40  ;;  %2370 = vmatmul.mubr.msk.bf16.gmra.mrb[12].mxu1 %vm717_vm4, %v652_v19  ;;  %v2522_v19 = vld [vmem:[%s2681_s24 + $0x80] ss:$8 sps:$4 sm:$0xff]   ;;  %v2526_v23 = vld [vmem:[%s2681_s24 + $0xa4] ss:$8 sps:$4 sm:$0xff]   ;;  %2373 = vmatprep.subr.bf16.mxu0 %v2544_v22 }
  0xb3   : > { %1205 = vmatpush1.bf16.msra.mxu1 %v2490_v20  ;;  %v637_v26 = vpack.c.bf16 %v2144_v24, %v2143_v25  ;;  %2236 = vmatprep.mubr.msk.bf16.mxu1 %vm1143_vm1, %v2498_v21  ;;  %v2523_v20 = vld [vmem:[%s2681_s24 + $0x94] ss:$8 sps:$4 sm:$0xff]   ;;  %v2525_v21 = vld [vmem:[%s2681_s24 + $0x90] ss:$8 sps:$4 sm:$0xff]   ;;  %v2545_v24 = vld [vmem:[%s3210_s6 + $0x8] sm:$0xff]  }
  0xb4   : > { %v456_v28 = vpop.permute.xlu1 %455  ;;  %v453_v29 = vpop.permute.xlu0 %452  ;;  %1206 = vmatprep.subr.bf16.mxu1 %v2568_v0  ;;  %v2528_v25 = vld [vmem:[%s2681_s24 + $0xa0] ss:$8 sps:$4 sm:$0xff]  }
  0xb5   : > { %vm544_vm5 = vcmp.eq.s32.totalorder %v2685_v35, %v456_v28  ;;  %vm543_vm6 = vcmp.eq.s32.totalorder %v2685_v35, %v453_v29  ;;  %2341 = vmatprep.mubr.msk.bf16.mxu0 %vm717_vm4, %v637_v26  ;;  %v2546_v26 = vld [vmem:[%s3210_s6 + $0x10] sm:$0xff]   ;;  %v2547_v28 = vld [vmem:[%s3210_s6 + $0x18] sm:$0xff]  }
  0xb6   : > { %v2146_v30 = vsel %vm544_vm5, 1.0, %v2569_v40  ;;  %v2145_v31 = vsel %vm543_vm6, 1.0, %v2569_v40  ;;  %v2531_v29 = vld [vmem:[%s2681_s24 + $0xb0] ss:$8 sps:$4 sm:$0xff]  }
  0xb7   : > { %v638_v32 = vpack.c.bf16 %v2146_v30, %v2145_v31  ;;  %1207 = vmatpush1.bf16.msra.mxu1 %v2491_v27  ;;  %v2529_v27 = vld [vmem:[%s2681_s24 + $0xb4] ss:$8 sps:$4 sm:$0xff]   ;;  %v2548_v30 = vld [vmem:[%s3210_s6 + $0x20] sm:$0xff]  }
  0xb8   : > { %v462_v34 = vpop.permute.xlu1 %461  ;;  %v459_v36 = vpop.permute.xlu0 %458  ;;  %1208 = vmatprep.subr.bf16.mxu1 %v2568_v0  ;;  %v2532_v31 = vld [vmem:[%s2681_s24 + $0xc4] ss:$8 sps:$4 sm:$0xff]  }
  0xb9   : > { %vm546_vm7 = vcmp.eq.s32.totalorder %v2685_v35, %v462_v34  ;;  %vm545_vm8 = vcmp.eq.s32.totalorder %v2685_v35, %v459_v36  ;;  %2342 = vmatmul.mubr.msk.bf16.vlgmr.msra.gmra.mrb[0].mxu0 %vm717_vm4, %v638_v32  ;;  %v2549_v32 = vld [vmem:[%s3210_s6 + $0x28] sm:$0xff]   ;;  %v2550_v34 = vld [vmem:[%s3210_s6 + $0x30] sm:$0xff]  }
  0xba   : > { %v2148_v37 = vsel %vm546_vm7, 1.0, %v2569_v40  ;;  %v2147_v38 = vsel %vm545_vm8, 1.0, %v2569_v40  ;;  %2374 = vmatpush3.bf16.msra.mxu0 %v2544_v22  ;;  %v2535_v36 = vld [vmem:[%s2681_s24 + $0xd4] ss:$8 sps:$4 sm:$0xff]  }
  0xbb   : > { %v639_v39 = vpack.c.bf16 %v2148_v37, %v2147_v38  ;;  %1209 = vmatpush1.bf16.msra.mxu1 %v2492_v33  ;;  %2375 = vmatprep.subr.bf16.mxu0 %v2545_v24  ;;  %v2534_v33 = vld [vmem:[%s2681_s24 + $0xc0] ss:$8 sps:$4 sm:$0xff]   ;;  %v2551_v37 = vld [vmem:[%s3210_s6 + $0x38] sm:$0xff]  }
  0xbc   : > { %v468_v42 = vpop.permute.xlu1 %467  ;;  %v465_v43 = vpop.permute.xlu0 %464  ;;  %1210 = vmatprep.subr.bf16.mxu1 %v2568_v0  ;;  %v2537_v38 = vld [vmem:[%s2681_s24 + $0xd0] ss:$8 sps:$4 sm:$0xff]  }
  0xbd   : > { %vm548_vm9 = vcmp.eq.s32.totalorder %v2685_v35, %v468_v42  ;;  %vm547_vm10 = vcmp.eq.s32.totalorder %v2685_v35, %v465_v43  ;;  %2345 = vmatprep.mubr.msk.bf16.mxu0 %vm717_vm4, %v639_v39  ;;  %v2538_v39 = vld [vmem:[%s2681_s24 + $0xe4] ss:$8 sps:$4 sm:$0xff]   ;;  %v2541_v42 = vld [vmem:[%s2681_s24 + $0xf4] ss:$8 sps:$4 sm:$0xff]   ;;  %v2543_v43 = vld [vmem:[%s2681_s24 + $0xf0] ss:$8 sps:$4 sm:$0xff]  }
  0xbe   : > { %v2150_v44 = vsel %vm548_vm9, 1.0, %v2569_v40  ;;  %v2149_v45 = vsel %vm547_vm10, 1.0, %v2569_v40  ;;  %2376 = vmatpush3.bf16.msra.mxu0 %v2545_v24 }
  0xbf   : > { %v640_v46 = vpack.c.bf16 %v2150_v44, %v2149_v45  ;;  %1211 = vmatpush1.bf16.msra.mxu1 %v2493_v41  ;;  %2377 = vmatprep.subr.bf16.mxu0 %v2546_v26  ;;  %v2540_v41 = vld [vmem:[%s2681_s24 + $0xe0] ss:$8 sps:$4 sm:$0xff]  }
  0xc0   : > { %v474_v48 = vpop.permute.xlu1 %473  ;;  %v471_v49 = vpop.permute.xlu0 %470  ;;  %1212 = vmatprep.subr.bf16.mxu1 %v2568_v0 }
  0xc1   : > { %vm550_vm11 = vcmp.eq.s32.totalorder %v2685_v35, %v474_v48  ;;  %vm549_vm12 = vcmp.eq.s32.totalorder %v2685_v35, %v471_v49  ;;  %2346 = vmatmul.mubr.msk.bf16.gmra.mrb[4].mxu0 %vm717_vm4, %v640_v46 }
  0xc2   : > { %v2152_v50 = vsel %vm550_vm11, 1.0, %v2569_v40  ;;  %v2151_v51 = vsel %vm549_vm12, 1.0, %v2569_v40  ;;  %2378 = vmatpush3.bf16.msra.mxu0 %v2546_v26 }
  0xc3   : > { %v641_v52 = vpack.c.bf16 %v2152_v50, %v2151_v51  ;;  %1213 = vmatpush1.bf16.msra.mxu1 %v2494_v47  ;;  %2379 = vmatprep.subr.bf16.mxu0 %v2547_v28 }
  0xc4   : > { %v480_v54 = vpop.permute.xlu1 %479  ;;  %v477_v55 = vpop.permute.xlu0 %476  ;;  %1214 = vmatprep.subr.bf16.mxu1 %v2568_v0 }
  0xc5   : > { %vm552_vm13 = vcmp.eq.s32.totalorder %v2685_v35, %v480_v54  ;;  %vm551_vm14 = vcmp.eq.s32.totalorder %v2685_v35, %v477_v55  ;;  %2349 = vmatprep.mubr.msk.bf16.mxu0 %vm717_vm4, %v641_v52 }
  0xc6   : > { %v2154_v56 = vsel %vm552_vm13, 1.0, %v2569_v40  ;;  %v2153_v57 = vsel %vm551_vm14, 1.0, %v2569_v40  ;;  %2380 = vmatpush3.bf16.msra.mxu0 %v2547_v28 }
  0xc7   : > { %v642_v59 = vpack.c.bf16 %v2154_v56, %v2153_v57  ;;  %1215 = vmatpush1.bf16.msra.mxu1 %v2495_v53  ;;  %2381 = vmatprep.subr.bf16.mxu0 %v2548_v30 }
  0xc8   : > { %v486_v61 = vpop.permute.xlu1 %485  ;;  %v483_v62 = vpop.permute.xlu0 %482 }
  0xc9   : > { %vm554_vm15 = vcmp.eq.s32.totalorder %v2685_v35, %v486_v61  ;;  %vm553_vm0 = vcmp.eq.s32.totalorder %v2685_v35, %v483_v62  ;;  %2350 = vmatmul.mubr.msk.bf16.gmra.mrb[8].mxu0 %vm717_vm4, %v642_v59 }
  0xca   : > { %v2156_v0 = vsel %vm554_vm15, 1.0, %v2569_v40  ;;  %v2155_v63 = vsel %vm553_vm0, 1.0, %v2569_v40  ;;  %1225 = vmatmul.mubr.bf16.vlgmr.msra.gmra.mrb[16].mxu1 %v2496_v58  ;;  %2382 = vmatpush3.bf16.msra.mxu0 %v2548_v30 }
  0xcb   : > { %v643_v1 = vpack.c.bf16 %v2156_v0, %v2155_v63  ;;  %2237 = vmatprep.mubr.msk.bf16.mxu1 %vm1143_vm1, %v2499_v60  ;;  %2383 = vmatprep.subr.bf16.mxu0 %v2549_v32 }
  0xcc   : > { %v492_v2 = vpop.permute.xlu1 %491  ;;  %v489_v3 = vpop.permute.xlu0 %488 }
  0xcd   : > { %vm556_vm2 = vcmp.eq.s32.totalorder %v2685_v35, %v492_v2  ;;  %vm555_vm3 = vcmp.eq.s32.totalorder %v2685_v35, %v489_v3  ;;  %2353 = vmatprep.mubr.msk.bf16.mxu0 %vm717_vm4, %v643_v1  ;;  %v2505_v35 = vld [vmem:[%s2681_s24 + $0x34] ss:$8 sps:$4 sm:$0xff]  }
  0xce   : > { %v2158_v4 = vsel %vm556_vm2, 1.0, %v2569_v40  ;;  %v2157_v5 = vsel %vm555_vm3, 1.0, %v2569_v40  ;;  %v2508_v40 = vld [vmem:[%s2681_s24 + $0x44] ss:$8 sps:$4 sm:$0xff]   ;;  %2384 = vmatpush3.bf16.msra.mxu0 %v2549_v32 }
  0xcf   : > { %v644_v7 = vpack.c.bf16 %v2158_v4, %v2157_v5  ;;  %2385 = vmatprep.subr.bf16.mxu0 %v2550_v34 }
  0xd1   : > { %2354 = vmatmul.mubr.msk.bf16.gmra.mrb[12].mxu0 %vm717_vm4, %v644_v7  ;;  %vm2016_vm4 = vcmask 64512  }
  0xd2   : > { %1233 = vmatmul.mubr.bf16.gmra.mrb[20].mxu1 %v2501_v6  ;;  %2386 = vmatpush3.bf16.msra.mxu0 %v2550_v34  ;;  %v2923_v6 = vld [vmem:[%s3209_s5] ss:$0 sm:$0xff] }
  0xd3   : > { %2238 = vmatprep.mubr.msk.bf16.mxu1 %vm1143_vm1, %v2502_v8  ;;  %2387 = vmatprep.subr.bf16.mxu0 %v2551_v37 }
  0xd6   : > { %2388 = vmatpush3.bf16.msra.mxu0 %v2551_v37 }
  0xda   : > { %1241 = vmatmul.mubr.bf16.gmra.mrb[24].mxu1 %v2504_v9 }
  0xdb   : > { %2239 = vmatprep.mubr.msk.bf16.mxu1 %vm1143_vm1, %v2505_v35 }
  0xe2   : > { %1249 = vmatmul.mubr.bf16.gmra.mrb[28].mxu1 %v2507_v10 }
  0xe3   : > { %2240 = vmatprep.mubr.msk.bf16.mxu1 %vm1143_vm1, %v2508_v40 }
  0xea   : > { %1257 = vmatmul.mubr.bf16.gmra.mrb[32].mxu1 %v2510_v11 }
  0xeb   : > { %2241 = vmatprep.mubr.msk.bf16.mxu1 %vm1143_vm1, %v2511_v12 }
  0xf2   : > { %1265 = vmatmul.mubr.bf16.gmra.mrb[36].mxu1 %v2513_v13 }
  0xf3   : > { %2242 = vmatprep.mubr.msk.bf16.mxu1 %vm1143_vm1, %v2514_v14  ;;  %v2552_v14 = vld [vmem:[%s3212_s8] sm:$0xff]  }
  0xf4   : > { %2421 = vmatprep.subr.bf16.mxu0 %v2552_v14 }
  0xfa   : > { %1273 = vmatmul.mubr.bf16.gmra.mrb[40].mxu1 %v2516_v15 }
  0xfb   : > { %2243 = vmatprep.mubr.msk.bf16.mxu1 %vm1143_vm1, %v2517_v16 }
 0x102   : > { %1281 = vmatmul.mubr.bf16.gmra.mrb[44].mxu1 %v2519_v17 }
 0x103   : > { %2244 = vmatprep.mubr.msk.bf16.mxu1 %vm1143_vm1, %v2520_v18 }
 0x10a   : > { %1289 = vmatmul.mubr.bf16.gmra.mrb[48].mxu1 %v2522_v19 }
 0x10b   : > { %2245 = vmatprep.mubr.msk.bf16.mxu1 %vm1143_vm1, %v2523_v20 }
 0x112   : > { %1297 = vmatmul.mubr.bf16.gmra.mrb[52].mxu1 %v2525_v21 }
 0x113   : > { %2246 = vmatprep.mubr.msk.bf16.mxu1 %vm1143_vm1, %v2526_v23 }
 0x11a   : > { %1305 = vmatmul.mubr.bf16.gmra.mrb[56].mxu1 %v2528_v25 }
 0x11b   : > { %2247 = vmatprep.mubr.msk.bf16.mxu1 %vm1143_vm1, %v2529_v27 }
 0x122   : > { %1313 = vmatmul.mubr.bf16.gmra.mrb[60].mxu1 %v2531_v29 }
 0x123   : > { %2248 = vmatprep.mubr.msk.bf16.mxu1 %vm1143_vm1, %v2532_v31 }
 0x12a   : > { %1321 = vmatmul.mubr.bf16.gmra.mrb[64].mxu1 %v2534_v33 }
 0x12b   : > { %2249 = vmatprep.mubr.msk.bf16.mxu1 %vm1143_vm1, %v2535_v36 }
 0x132   : > { %1329 = vmatmul.mubr.bf16.gmra.mrb[68].mxu1 %v2537_v38  ;;  %v2553_v38 = vld [vmem:[%s3212_s8 + $0x8] sm:$0xff]  }
 0x133   : > { %2250 = vmatprep.mubr.msk.bf16.mxu1 %vm1143_vm1, %v2538_v39 }
 0x13a   : > { %1337 = vmatmul.mubr.bf16.gmra.mrb[72].mxu1 %v2540_v41 }
 0x13b   : > { %2251 = vmatprep.mubr.msk.bf16.mxu1 %vm1143_vm1, %v2541_v42 }
 0x142   : > { %1345 = vmatmul.mubr.bf16.gmra.mrb[76].mxu1 %v2543_v43 }
 0x16d   : > { %v2886_v44 = vpop.f32.mrb[0].mxu1 }
 0x16e   : > { %v2888_v45 = vpop.f32.mrb[1].mxu1 }
 0x16f   : > { %v2890_v46 = vpop.f32.mrb[2].mxu1 }
 0x170   : > { %v2892_v47 = vpop.f32.mrb[3].mxu1 }
 0x175   : > { %v2894_v48 = vpop.f32.mrb[4].mxu1 }
 0x176   : > { %v2896_v49 = vpop.f32.mrb[5].mxu1 }
 0x177   : > { %v2898_v50 = vpop.f32.mrb[6].mxu1 }
 0x178   : > { %v2900_v51 = vpop.f32.mrb[7].mxu1 }
 0x17d   : > { %v2902_v52 = vpop.f32.mrb[8].mxu1 }
 0x17e   : > { %v2904_v53 = vpop.f32.mrb[9].mxu1 }
 0x17f   : > { %v2906_v54 = vpop.f32.mrb[10].mxu1 }
 0x180   : > { %v2908_v55 = vpop.f32.mrb[11].mxu1 }
 0x185   : > { %v2910_v56 = vpop.f32.mrb[12].mxu1 }
 0x186   : > { %v2912_v57 = vpop.f32.mrb[13].mxu1 }
 0x187   : > { %v2914_v58 = vpop.f32.mrb[14].mxu1 }
 0x188   : > { %v2916_v59 = vpop.f32.mrb[15].mxu1 }
 0x18c   : > { %v2343_v60 = vpop.f32.mrb[0].mxu0 }
 0x18d   : > { %v800_v61 = vpop.f32.mrb[1].mxu0 }
 0x18e   : > { %v2344_v62 = vpop.f32.mrb[2].mxu0 }
 0x18f   : > { %v803_v0 = vpop.f32.mrb[3].mxu0 }
 0x194   : > { %v2347_v63 = vpop.f32.mrb[4].mxu0 }
 0x195   : > { %v816_v1 = vpop.f32.mrb[5].mxu0 }
 0x196   : > { %v2348_v2 = vpop.f32.mrb[6].mxu0 }
 0x197   : > { %v819_v3 = vpop.f32.mrb[7].mxu0 }
 0x19c   : > { %v2918_v4 = vpop.f32.mrb[8].mxu0 }
 0x19d   : > { %v1226_v5 = vpop.f32.mrb[16].mxu1  ;;  %v2925_v7 = vpop.f32.mrb[9].mxu0 }
 0x19e   : > { %v1227_v8 = vadd.f32 %v1226_v5, %v800_v61  ;;  %v1228_v9 = vpop.f32.mrb[17].mxu1  ;;  %v2927_v35 = vpop.f32.mrb[10].mxu0  ;;  %v2554_v61 = vld [vmem:[%s3212_s8 + $0x10] sm:$0xff]  }
 0x19f   : > { %v1229_v10 = vpop.f32.mrb[18].mxu1  ;;  %v2929_v40 = vpop.f32.mrb[11].mxu0 }
 0x1a0   : > { %v1360_v11 = vadd.f32 %v2923_v6, %v1227_v8  ;;  %v1230_v12 = vadd.f32 %v1229_v10, %v803_v0  ;;  %v1231_v13 = vpop.f32.mrb[19].mxu1 }
 0x1a2   : > { %v1361_v15 = vadd.f32 %v2923_v6, %v1230_v12  ;;  %v1392_v16 = vmax.f32 %v1360_v11, 0.0 }
 0x1a4   : > { %v1393_v17 = vmax.f32 %v1361_v15, 0.0  ;;  %v2936_v18 = vpop.f32.mrb[12].mxu0 }
 0x1a5   : > { %v1234_v19 = vpop.f32.mrb[20].mxu1  ;;  %v2938_v20 = vpop.f32.mrb[13].mxu0 }
 0x1a6   : > { %v1235_v21 = vadd.f32 %v2343_v60, %v1234_v19  ;;  %v1236_v22 = vpop.f32.mrb[21].mxu1  ;;  %v2940_v23 = vpop.f32.mrb[14].mxu0  ;;  %v1424_v24 = vpack.c.bf16 %v1393_v17, %v1392_v16 }
 0x1a7   : > { %v1237_v25 = vpop.f32.mrb[22].mxu1  ;;  %v2942_v26 = vpop.f32.mrb[15].mxu0 }
 0x1a8   : > { %v1362_v27 = vadd.f32 %v2923_v6, %v1235_v21  ;;  %v1238_v28 = vadd.f32 %v2344_v62, %v1237_v25  ;;  %v1239_v29 = vpop.f32.mrb[23].mxu1  ;;  %2389 = vmatprep.mubr.bf16.mxu0 %v1424_v24 }
 0x1aa   : > { %v1363_v30 = vadd.f32 %v2923_v6, %v1238_v28  ;;  %v1394_v31 = vmax.f32 %v1362_v27, 0.0 }
 0x1ac   : > { %v1395_v32 = vmax.f32 %v1363_v30, 0.0 }
 0x1ad   : > { %v1242_v33 = vpop.f32.mrb[24].mxu1 }
 0x1ae   : > { %v1425_v34 = vpack.c.bf16 %v1395_v32, %v1394_v31  ;;  %v1243_v36 = vadd.f32 %v1242_v33, %v816_v1  ;;  %v1244_v37 = vpop.f32.mrb[25].mxu1 }
 0x1af   : > { %v1245_v39 = vpop.f32.mrb[26].mxu1 }
 0x1b0   : > { %v1364_v41 = vadd.f32 %v2923_v6, %v1243_v36  ;;  %v1246_v42 = vadd.f32 %v1245_v39, %v819_v3  ;;  %v1247_v43 = vpop.f32.mrb[27].mxu1  ;;  %2390 = vmatmul.mubr.bf16.vlgmr.msra.gmra.mrb[16].mxu0 %v1425_v34  ;;  %v2555_v3 = vld [vmem:[%s3212_s8 + $0x18] sm:$0xff]  }
 0x1b1   : > { %2422 = vmatpush3.bf16.msra.mxu0 %v2552_v14 }
 0x1b2   : > { %v1365_v60 = vadd.f32 %v2923_v6, %v1246_v42  ;;  %2423 = vmatprep.subr.bf16.mxu0 %v2553_v38  ;;  %v1396_v62 = vmax.f32 %v1364_v41, 0.0 }
 0x1b4   : > { %v1397_v0 = vmax.f32 %v1365_v60, 0.0 }
 0x1b5   : > { %v1250_v1 = vpop.f32.mrb[28].mxu1  ;;  %2424 = vmatpush3.bf16.msra.mxu0 %v2553_v38 }
 0x1b6   : > { %v1251_v5 = vadd.f32 %v2347_v63, %v1250_v1  ;;  %v1252_v8 = vpop.f32.mrb[29].mxu1  ;;  %v1426_v9 = vpack.c.bf16 %v1397_v0, %v1396_v62  ;;  %2425 = vmatprep.subr.bf16.mxu0 %v2554_v61  ;;  %v2556_v63 = vld [vmem:[%s3212_s8 + $0x20] sm:$0xff]  }
 0x1b7   : > { %v1253_v10 = vpop.f32.mrb[30].mxu1 }
 0x1b8   : > { %v1366_v11 = vadd.f32 %v2923_v6, %v1251_v5  ;;  %v1254_v12 = vadd.f32 %v2348_v2, %v1253_v10  ;;  %v1255_v13 = vpop.f32.mrb[31].mxu1  ;;  %2393 = vmatprep.mubr.bf16.mxu0 %v1426_v9  ;;  %v2557_v2 = vld [vmem:[%s3212_s8 + $0x28] sm:$0xff]  }
 0x1b9   : > { %2426 = vmatpush3.bf16.msra.mxu0 %v2554_v61 }
 0x1ba   : > { %v1367_v14 = vadd.f32 %v2923_v6, %v1254_v12  ;;  %2427 = vmatprep.subr.bf16.mxu0 %v2555_v3  ;;  %v1398_v15 = vmax.f32 %v1366_v11, 0.0 }
 0x1bc   : > { %v1399_v16 = vmax.f32 %v1367_v14, 0.0 }
 0x1bd   : > { %v1258_v17 = vpop.f32.mrb[32].mxu1  ;;  %2428 = vmatpush3.bf16.msra.mxu0 %v2555_v3 }
 0x1be   : > { %v1259_v19 = vadd.f32 %v1258_v17, %v2925_v7  ;;  %v1260_v21 = vpop.f32.mrb[33].mxu1  ;;  %v1427_v22 = vpack.c.bf16 %v1399_v16, %v1398_v15  ;;  %2429 = vmatprep.subr.bf16.mxu0 %v2556_v63 }
 0x1bf   : > { %v1261_v24 = vpop.f32.mrb[34].mxu1 }
 0x1c0   : > { %v1368_v25 = vadd.f32 %v2923_v6, %v1259_v19  ;;  %v1262_v27 = vadd.f32 %v1261_v24, %v2929_v40  ;;  %v1263_v28 = vpop.f32.mrb[35].mxu1  ;;  %2394 = vmatmul.mubr.bf16.gmra.mrb[20].mxu0 %v1427_v22 }
 0x1c1   : > { %2430 = vmatpush3.bf16.msra.mxu0 %v2556_v63 }
 0x1c2   : > { %v1369_v29 = vadd.f32 %v2923_v6, %v1262_v27  ;;  %2431 = vmatprep.subr.bf16.mxu0 %v2557_v2  ;;  %v1400_v30 = vmax.f32 %v1368_v25, 0.0 }
 0x1c4   : > { %v1401_v7 = vmax.f32 %v1369_v29, 0.0 }
 0x1c5   : > { %v1266_v31 = vpop.f32.mrb[36].mxu1  ;;  %2432 = vmatpush3.bf16.msra.mxu0 %v2557_v2 }
 0x1c6   : > { %v1267_v32 = vadd.f32 %v2918_v4, %v1266_v31  ;;  %v1268_v33 = vpop.f32.mrb[37].mxu1  ;;  %v1428_v34 = vpack.c.bf16 %v1401_v7, %v1400_v30 }
 0x1c7   : > { %v1269_v36 = vpop.f32.mrb[38].mxu1 }
 0x1c8   : > { %v1370_v37 = vadd.f32 %v2923_v6, %v1267_v32  ;;  %v1270_v38 = vadd.f32 %v2927_v35, %v1269_v36  ;;  %v1271_v40 = vpop.f32.mrb[39].mxu1  ;;  %2397 = vmatprep.mubr.bf16.mxu0 %v1428_v34 }
 0x1ca   : > { %v1371_v39 = vadd.f32 %v2923_v6, %v1270_v38  ;;  %v1402_v41 = vmax.f32 %v1370_v37, 0.0 }
 0x1cc   : > { %v1403_v42 = vmax.f32 %v1371_v39, 0.0 }
 0x1cd   : > { %v1274_v43 = vpop.f32.mrb[40].mxu1 }
 0x1ce   : > { %v1275_v60 = vadd.f32 %v1274_v43, %v2938_v20  ;;  %v1276_v61 = vpop.f32.mrb[41].mxu1  ;;  %v1429_v62 = vpack.c.bf16 %v1403_v42, %v1402_v41 }
 0x1cf   : > { %v1277_v0 = vpop.f32.mrb[42].mxu1 }
 0x1d0   : > { %v1372_v4 = vadd.f32 %v2923_v6, %v1275_v60  ;;  %v1278_v1 = vadd.f32 %v1277_v0, %v2942_v26  ;;  %v1279_v5 = vpop.f32.mrb[43].mxu1  ;;  %2398 = vmatmul.mubr.bf16.gmra.mrb[24].mxu0 %v1429_v62 }
 0x1d2   : > { %v1373_v35 = vadd.f32 %v2923_v6, %v1278_v1  ;;  %v1404_v8 = vmax.f32 %v1372_v4, 0.0 }
 0x1d4   : > { %v1405_v9 = vmax.f32 %v1373_v35, 0.0 }
 0x1d5   : > { %v1282_v3 = vpop.f32.mrb[44].mxu1 }
 0x1d6   : > { %v1283_v10 = vadd.f32 %v2936_v18, %v1282_v3  ;;  %v1284_v11 = vpop.f32.mrb[45].mxu1  ;;  %v1430_v12 = vpack.c.bf16 %v1405_v9, %v1404_v8 }
 0x1d7   : > { %v1285_v13 = vpop.f32.mrb[46].mxu1 }
 0x1d8   : > { %v1374_v20 = vadd.f32 %v2923_v6, %v1283_v10  ;;  %v1286_v14 = vadd.f32 %v2940_v23, %v1285_v13  ;;  %v1287_v63 = vpop.f32.mrb[47].mxu1  ;;  %2401 = vmatprep.mubr.bf16.mxu0 %v1430_v12 }
 0x1da   : > { %v1375_v26 = vadd.f32 %v2923_v6, %v1286_v14  ;;  %v1406_v15 = vmax.f32 %v1374_v20, 0.0 }
 0x1dc   : > { %v1407_v16 = vmax.f32 %v1375_v26, 0.0 }
 0x1dd   : > { %v1290_v17 = vpop.f32.mrb[48].mxu1 }
 0x1de   : > { %v1291_v19 = vadd.f32 %v1290_v17, %v2888_v45  ;;  %v1292_v21 = vpop.f32.mrb[49].mxu1  ;;  %v1431_v22 = vpack.c.bf16 %v1407_v16, %v1406_v15  ;;  %v2558_v17 = vld [vmem:[%s3212_s8 + $0x30] sm:$0xff]  }
 0x1df   : > { %v1293_v2 = vpop.f32.mrb[50].mxu1  ;;  %2433 = vmatprep.subr.bf16.mxu0 %v2558_v17 }
 0x1e0   : > { %v1376_v18 = vadd.f32 %v2923_v6, %v1291_v19  ;;  %v1294_v24 = vadd.f32 %v1293_v2, %v2892_v47  ;;  %v1295_v25 = vpop.f32.mrb[51].mxu1  ;;  %2402 = vmatmul.mubr.bf16.gmra.mrb[28].mxu0 %v1431_v22 }
 0x1e1   : > { %2434 = vmatpush3.bf16.msra.mxu0 %v2558_v17  ;;  %v2559_v25 = vld [vmem:[%s3212_s8 + $0x38] sm:$0xff]  }
 0x1e2   : > { %v1377_v23 = vadd.f32 %v2923_v6, %v1294_v24  ;;  %v1408_v27 = vmax.f32 %v1376_v18, 0.0  ;;  %2435 = vmatprep.subr.bf16.mxu0 %v2559_v25 }
 0x1e4   : > { %v1409_v28 = vmax.f32 %v1377_v23, 0.0 }
 0x1e5   : > { %v1298_v29 = vpop.f32.mrb[52].mxu1  ;;  %2436 = vmatpush3.bf16.msra.mxu0 %v2559_v25 }
 0x1e6   : > { %v1299_v30 = vadd.f32 %v2886_v44, %v1298_v29  ;;  %v1300_v7 = vpop.f32.mrb[53].mxu1  ;;  %v1432_v31 = vpack.c.bf16 %v1409_v28, %v1408_v27 }
 0x1e7   : > { %v1301_v32 = vpop.f32.mrb[54].mxu1 }
 0x1e8   : > { %v1378_v45 = vadd.f32 %v2923_v6, %v1299_v30  ;;  %v1302_v33 = vadd.f32 %v2890_v46, %v1301_v32  ;;  %v1303_v34 = vpop.f32.mrb[55].mxu1  ;;  %2405 = vmatprep.mubr.bf16.mxu0 %v1432_v31 }
 0x1ea   : > { %v1379_v47 = vadd.f32 %v2923_v6, %v1302_v33  ;;  %v1410_v36 = vmax.f32 %v1378_v45, 0.0 }
 0x1ec   : > { %v1411_v37 = vmax.f32 %v1379_v47, 0.0 }
 0x1ed   : > { %v1306_v38 = vpop.f32.mrb[56].mxu1 }
 0x1ee   : > { %v1307_v40 = vadd.f32 %v1306_v38, %v2896_v49  ;;  %v1308_v39 = vpop.f32.mrb[57].mxu1  ;;  %v1433_v41 = vpack.c.bf16 %v1411_v37, %v1410_v36 }
 0x1ef   : > { %v1309_v42 = vpop.f32.mrb[58].mxu1 }
 0x1f0   : > { %v1380_v44 = vadd.f32 %v2923_v6, %v1307_v40  ;;  %v1310_v43 = vadd.f32 %v1309_v42, %v2900_v51  ;;  %v1311_v60 = vpop.f32.mrb[59].mxu1  ;;  %2406 = vmatmul.mubr.bf16.gmra.mrb[32].mxu0 %v1433_v41 }
 0x1f2   : > { %v1381_v46 = vadd.f32 %v2923_v6, %v1310_v43  ;;  %v1412_v61 = vmax.f32 %v1380_v44, 0.0 }
 0x1f4   : > { %v1413_v62 = vmax.f32 %v1381_v46, 0.0  ;;  %v3022_v46 = vld [vmem:[%s3211_s7] ss:$0 sm:$0xff] }
 0x1f5   : > { %v1314_v0 = vpop.f32.mrb[60].mxu1 }
 0x1f6   : > { %v1315_v4 = vadd.f32 %v2894_v48, %v1314_v0  ;;  %v1316_v1 = vpop.f32.mrb[61].mxu1  ;;  %v1434_v5 = vpack.c.bf16 %v1413_v62, %v1412_v61 }
 0x1f7   : > { %v1317_v35 = vpop.f32.mrb[62].mxu1 }
 0x1f8   : > { %v1382_v49 = vadd.f32 %v2923_v6, %v1315_v4  ;;  %v1318_v8 = vadd.f32 %v2898_v50, %v1317_v35  ;;  %v1319_v9 = vpop.f32.mrb[63].mxu1  ;;  %2409 = vmatprep.mubr.bf16.mxu0 %v1434_v5 }
 0x1fa   : > { %v1383_v51 = vadd.f32 %v2923_v6, %v1318_v8  ;;  %v1414_v3 = vmax.f32 %v1382_v49, 0.0 }
 0x1fc   : > { %v1415_v10 = vmax.f32 %v1383_v51, 0.0 }
 0x1fd   : > { %v1322_v11 = vpop.f32.mrb[64].mxu1 }
 0x1fe   : > { %v1323_v12 = vadd.f32 %v1322_v11, %v2904_v53  ;;  %v1324_v13 = vpop.f32.mrb[65].mxu1  ;;  %v1435_v20 = vpack.c.bf16 %v1415_v10, %v1414_v3 }
 0x1ff   : > { %v1325_v14 = vpop.f32.mrb[66].mxu1 }
 0x200   : > { %v1384_v48 = vadd.f32 %v2923_v6, %v1323_v12  ;;  %v1326_v63 = vadd.f32 %v1325_v14, %v2908_v55  ;;  %v1327_v26 = vpop.f32.mrb[67].mxu1  ;;  %2410 = vmatmul.mubr.bf16.gmra.mrb[36].mxu0 %v1435_v20 }
 0x202   : > { %v1385_v50 = vadd.f32 %v2923_v6, %v1326_v63  ;;  %v1416_v15 = vmax.f32 %v1384_v48, 0.0 }
 0x204   : > { %v1417_v16 = vmax.f32 %v1385_v50, 0.0 }
 0x205   : > { %v1330_v19 = vpop.f32.mrb[68].mxu1 }
 0x206   : > { %v1331_v53 = vadd.f32 %v2902_v52, %v1330_v19  ;;  %v1332_v21 = vpop.f32.mrb[69].mxu1  ;;  %v1436_v22 = vpack.c.bf16 %v1417_v16, %v1416_v15 }
 0x207   : > { %v1333_v2 = vpop.f32.mrb[70].mxu1 }
 0x208   : > { %v1386_v55 = vadd.f32 %v2923_v6, %v1331_v53  ;;  %v1334_v18 = vadd.f32 %v2906_v54, %v1333_v2  ;;  %v1335_v24 = vpop.f32.mrb[71].mxu1  ;;  %2413 = vmatprep.mubr.bf16.mxu0 %v1436_v22 }
 0x20a   : > { %v1387_v23 = vadd.f32 %v2923_v6, %v1334_v18  ;;  %v1418_v52 = vmax.f32 %v1386_v55, 0.0 }
 0x20c   : > { %v1419_v27 = vmax.f32 %v1387_v23, 0.0 }
 0x20d   : > { %v1338_v28 = vpop.f32.mrb[72].mxu1 }
 0x20e   : > { %v1339_v29 = vadd.f32 %v1338_v28, %v2912_v57  ;;  %v1340_v30 = vpop.f32.mrb[73].mxu1  ;;  %v1437_v7 = vpack.c.bf16 %v1419_v27, %v1418_v52 }
 0x20f   : > { %v1341_v31 = vpop.f32.mrb[74].mxu1 }
 0x210   : > { %v1388_v54 = vadd.f32 %v2923_v6, %v1339_v29  ;;  %v1342_v32 = vadd.f32 %v1341_v31, %v2916_v59  ;;  %v1343_v45 = vpop.f32.mrb[75].mxu1  ;;  %2414 = vmatmul.mubr.bf16.gmra.mrb[40].mxu0 %v1437_v7 }
 0x212   : > { %v1389_v33 = vadd.f32 %v2923_v6, %v1342_v32  ;;  %v1420_v34 = vmax.f32 %v1388_v54, 0.0 }
 0x214   : > { %v1421_v47 = vmax.f32 %v1389_v33, 0.0 }
 0x215   : > { %v1346_v36 = vpop.f32.mrb[76].mxu1 }
 0x216   : > { %v1347_v37 = vadd.f32 %v2910_v56, %v1346_v36  ;;  %v1348_v38 = vpop.f32.mrb[77].mxu1  ;;  %v1438_v40 = vpack.c.bf16 %v1421_v47, %v1420_v34 }
 0x217   : > { %v1349_v39 = vpop.f32.mrb[78].mxu1 }
 0x218   : > { %v1390_v57 = vadd.f32 %v2923_v6, %v1347_v37  ;;  %v1350_v41 = vadd.f32 %v2914_v58, %v1349_v39  ;;  %v1351_v42 = vpop.f32.mrb[79].mxu1  ;;  %2417 = vmatprep.mubr.bf16.mxu0 %v1438_v40 }
 0x21a   : > { %v1391_v59 = vadd.f32 %v2923_v6, %v1350_v41  ;;  %v1422_v44 = vmax.f32 %v1390_v57, 0.0 }
 0x21c   : > { %v1423_v43 = vmax.f32 %v1391_v59, 0.0 }
 0x21e   : > { %v1439_v60 = vpack.c.bf16 %v1423_v43, %v1422_v44 }
 0x220   : > { %2418 = vmatmul.mubr.bf16.gmra.mrb[44].mxu0 %v1439_v60 }
 0x283   : > { %v2391_v56 = vpop.f32.mrb[16].mxu0 }
 0x284   : > { %v1554_v61 = vadd.f32 %v2391_v56, %v3022_v46  ;;  %v1545_v62 = vpop.f32.mrb[17].mxu0 }
 0x285   : > { %v1546_v0 = vadd.f32 %v3022_v46, %v1545_v62  ;;  %v2392_v58 = vpop.f32.mrb[18].mxu0 }
 0x286   : > { %v1557_v4 = vadd.f32 %v2392_v58, %v3022_v46  ;;  %v1548_v1 = vpop.f32.mrb[19].mxu0  ;;  %v1674_v5 = vmax.f32 %v1554_v61, 0.0 }
 0x287   : > { %v1549_v6 = vadd.f32 %v3022_v46, %v1548_v1  ;;  %v1672_v49 = vmax.f32 %v1546_v0, 0.0 }
 0x288   : > { %v1675_v35 = vmax.f32 %v1557_v4, 0.0 }
 0x289   : > { %v1673_v8 = vmax.f32 %v1549_v6, 0.0 }
 0x28a   : > { %v1705_v9 = vpack.c.bf16 %v1675_v35, %v1674_v5 }
 0x28b   : > { %v1704_v51 = vpack.c.bf16 %v1673_v8, %v1672_v49 }
 0x28d   : > { %2437 = vmatprep.mubr.bf16.mxu0 %v1704_v51 }
 0x28e   : > { %2438 = vmatmul.mubr.bf16.vlgmr.msra.gmra.mrb[48].mxu0 %v1705_v9 }
 0x293   : > { %v2395_v3 = vpop.f32.mrb[20].mxu0 }
 0x294   : > { %v1570_v10 = vadd.f32 %v2395_v3, %v3022_v46  ;;  %v1561_v11 = vpop.f32.mrb[21].mxu0 }
 0x295   : > { %v1562_v12 = vadd.f32 %v3022_v46, %v1561_v11  ;;  %v2396_v13 = vpop.f32.mrb[22].mxu0 }
 0x296   : > { %v1573_v20 = vadd.f32 %v2396_v13, %v3022_v46  ;;  %v1564_v14 = vpop.f32.mrb[23].mxu0  ;;  %v1678_v63 = vmax.f32 %v1570_v10, 0.0 }
 0x297   : > { %v1565_v48 = vadd.f32 %v3022_v46, %v1564_v14  ;;  %v1676_v50 = vmax.f32 %v1562_v12, 0.0 }
 0x298   : > { %v1679_v26 = vmax.f32 %v1573_v20, 0.0 }
 0x299   : > { %v1677_v15 = vmax.f32 %v1565_v48, 0.0 }
 0x29a   : > { %v1707_v16 = vpack.c.bf16 %v1679_v26, %v1678_v63 }
 0x29b   : > { %v1706_v17 = vpack.c.bf16 %v1677_v15, %v1676_v50 }
 0x29d   : > { %2441 = vmatprep.mubr.bf16.mxu0 %v1706_v17 }
 0x29e   : > { %2442 = vmatmul.mubr.bf16.gmra.mrb[52].mxu0 %v1707_v16 }
 0x2a3   : > { %v2399_v19 = vpop.f32.mrb[24].mxu0 }
 0x2a4   : > { %v1586_v53 = vadd.f32 %v2399_v19, %v3022_v46  ;;  %v1577_v21 = vpop.f32.mrb[25].mxu0 }
 0x2a5   : > { %v1578_v22 = vadd.f32 %v3022_v46, %v1577_v21  ;;  %v2400_v2 = vpop.f32.mrb[26].mxu0 }
 0x2a6   : > { %v1589_v55 = vadd.f32 %v2400_v2, %v3022_v46  ;;  %v1580_v18 = vpop.f32.mrb[27].mxu0  ;;  %v1682_v25 = vmax.f32 %v1586_v53, 0.0 }
 0x2a7   : > { %v1581_v24 = vadd.f32 %v3022_v46, %v1580_v18  ;;  %v1680_v52 = vmax.f32 %v1578_v22, 0.0 }
 0x2a8   : > { %v1683_v23 = vmax.f32 %v1589_v55, 0.0 }
 0x2a9   : > { %v1681_v27 = vmax.f32 %v1581_v24, 0.0 }
 0x2aa   : > { %v1709_v28 = vpack.c.bf16 %v1683_v23, %v1682_v25 }
 0x2ab   : > { %v1708_v29 = vpack.c.bf16 %v1681_v27, %v1680_v52 }
 0x2ad   : > { %2445 = vmatprep.mubr.bf16.mxu0 %v1708_v29 }
 0x2ae   : > { %2446 = vmatmul.mubr.bf16.gmra.mrb[56].mxu0 %v1709_v28 }
 0x2b3   : > { %v2403_v30 = vpop.f32.mrb[28].mxu0 }
 0x2b4   : > { %v1602_v7 = vadd.f32 %v2403_v30, %v3022_v46  ;;  %v1593_v31 = vpop.f32.mrb[29].mxu0 }
 0x2b5   : > { %v1594_v54 = vadd.f32 %v3022_v46, %v1593_v31  ;;  %v2404_v32 = vpop.f32.mrb[30].mxu0 }
 0x2b6   : > { %v1605_v45 = vadd.f32 %v2404_v32, %v3022_v46  ;;  %v1596_v33 = vpop.f32.mrb[31].mxu0  ;;  %v1686_v47 = vmax.f32 %v1602_v7, 0.0 }
 0x2b7   : > { %v1597_v34 = vadd.f32 %v3022_v46, %v1596_v33  ;;  %v1684_v37 = vmax.f32 %v1594_v54, 0.0 }
 0x2b8   : > { %v1687_v36 = vmax.f32 %v1605_v45, 0.0 }
 0x2b9   : > { %v1685_v38 = vmax.f32 %v1597_v34, 0.0 }
 0x2ba   : > { %v1711_v40 = vpack.c.bf16 %v1687_v36, %v1686_v47  ;;  %v1954_v47 = vld [vmem:[%s3060_s15 + $0x10] sm:$0xff] }
 0x2bb   : > { %v1710_v39 = vpack.c.bf16 %v1685_v38, %v1684_v37  ;;  %v1952_v38 = vld [vmem:[%s3060_s15] sm:$0xff] }
 0x2bd   : > { %2449 = vmatprep.mubr.bf16.mxu0 %v1710_v39 }
 0x2be   : > { %2450 = vmatmul.mubr.bf16.gmra.mrb[60].mxu0 %v1711_v40 }
 0x2c3   : > { %v2407_v57 = vpop.f32.mrb[32].mxu0 }
 0x2c4   : > { %v1618_v41 = vadd.f32 %v2407_v57, %v3022_v46  ;;  %v1609_v42 = vpop.f32.mrb[33].mxu0  ;;  %v1955_v57 = vld [vmem:[%s3060_s15 + $0x18] sm:$0xff] }
 0x2c5   : > { %v1610_v59 = vadd.f32 %v3022_v46, %v1609_v42  ;;  %v2408_v44 = vpop.f32.mrb[34].mxu0 }
 0x2c6   : > { %v1621_v43 = vadd.f32 %v2408_v44, %v3022_v46  ;;  %v1612_v60 = vpop.f32.mrb[35].mxu0  ;;  %v1690_v61 = vmax.f32 %v1618_v41, 0.0  ;;  %v1953_v44 = vld [vmem:[%s3060_s15 + $0x8] sm:$0xff] }
 0x2c7   : > { %v1613_v56 = vadd.f32 %v3022_v46, %v1612_v60  ;;  %v1688_v0 = vmax.f32 %v1610_v59, 0.0 }
 0x2c8   : > { %v1691_v62 = vmax.f32 %v1621_v43, 0.0 }
 0x2c9   : > { %v1689_v58 = vmax.f32 %v1613_v56, 0.0 }
 0x2ca   : > { %v1713_v4 = vpack.c.bf16 %v1691_v62, %v1690_v61 }
 0x2cb   : > { %v1712_v1 = vpack.c.bf16 %v1689_v58, %v1688_v0  ;;  %v1958_v0 = vld [vmem:[%s3060_s15 + $0x30] sm:$0xff] }
 0x2cd   : > { %2453 = vmatprep.mubr.bf16.mxu0 %v1712_v1  ;;  %v1956_v1 = vld [vmem:[%s3060_s15 + $0x20] sm:$0xff] }
 0x2ce   : > { %2454 = vmatmul.mubr.bf16.gmra.mrb[64].mxu0 %v1713_v4 }
 0x2d3   : > { %v2411_v6 = vpop.f32.mrb[36].mxu0 }
 0x2d4   : > { %v1634_v5 = vadd.f32 %v2411_v6, %v3022_v46  ;;  %v1625_v35 = vpop.f32.mrb[37].mxu0 }
 0x2d5   : > { %v1626_v49 = vadd.f32 %v3022_v46, %v1625_v35  ;;  %v2412_v8 = vpop.f32.mrb[38].mxu0  ;;  %v1959_v35 = vld [vmem:[%s3060_s15 + $0x38] sm:$0xff] }
 0x2d6   : > { %v1637_v9 = vadd.f32 %v2412_v8, %v3022_v46  ;;  %v1628_v51 = vpop.f32.mrb[39].mxu0  ;;  %v1694_v10 = vmax.f32 %v1634_v5, 0.0 }
 0x2d7   : > { %v1629_v3 = vadd.f32 %v3022_v46, %v1628_v51  ;;  %v1692_v12 = vmax.f32 %v1626_v49, 0.0  ;;  %v1957_v51 = vld [vmem:[%s3060_s15 + $0x28] sm:$0xff] }
 0x2d8   : > { %v1695_v11 = vmax.f32 %v1637_v9, 0.0 }
 0x2d9   : > { %v1693_v13 = vmax.f32 %v1629_v3, 0.0 }
 0x2da   : > { %v1715_v20 = vpack.c.bf16 %v1695_v11, %v1694_v10 }
 0x2db   : > { %v1714_v14 = vpack.c.bf16 %v1693_v13, %v1692_v12 }
 0x2dd   : > { %2457 = vmatprep.mubr.bf16.mxu0 %v1714_v14 }
 0x2de   : > { %2458 = vmatmul.mubr.bf16.gmra.mrb[68].mxu0 %v1715_v20  ;;  %v1962_v20 = vld [vmem:[%s3060_s15 + $0x50] sm:$0xff] }
 0x2e3   : > { %v2415_v48 = vpop.f32.mrb[40].mxu0 }
 0x2e4   : > { %v1650_v63 = vadd.f32 %v2415_v48, %v3022_v46  ;;  %v1641_v26 = vpop.f32.mrb[41].mxu0 }
 0x2e5   : > { %v1642_v50 = vadd.f32 %v3022_v46, %v1641_v26  ;;  %v2416_v15 = vpop.f32.mrb[42].mxu0 }
 0x2e6   : > { %v1653_v16 = vadd.f32 %v2416_v15, %v3022_v46  ;;  %v1644_v17 = vpop.f32.mrb[43].mxu0  ;;  %v1698_v53 = vmax.f32 %v1650_v63, 0.0  ;;  %v1960_v63 = vld [vmem:[%s3060_s15 + $0x40] sm:$0xff]  ;;  %v1963_v15 = vld [vmem:[%s3060_s15 + $0x58] sm:$0xff] }
 0x2e7   : > { %v1645_v19 = vadd.f32 %v3022_v46, %v1644_v17  ;;  %v1696_v22 = vmax.f32 %v1642_v50, 0.0 }
 0x2e8   : > { %v1699_v21 = vmax.f32 %v1653_v16, 0.0 }
 0x2e9   : > { %v1697_v2 = vmax.f32 %v1645_v19, 0.0 }
 0x2ea   : > { %v1717_v55 = vpack.c.bf16 %v1699_v21, %v1698_v53  ;;  %v1961_v53 = vld [vmem:[%s3060_s15 + $0x48] sm:$0xff] }
 0x2eb   : > { %v1716_v18 = vpack.c.bf16 %v1697_v2, %v1696_v22 }
 0x2ed   : > { %2461 = vmatprep.mubr.bf16.mxu0 %v1716_v18 }
 0x2ee   : > { %2462 = vmatmul.mubr.bf16.gmra.mrb[72].mxu0 %v1717_v55 }
 0x2f3   : > { %v2419_v24 = vpop.f32.mrb[44].mxu0 }
 0x2f4   : > { %v1666_v25 = vadd.f32 %v2419_v24, %v3022_v46  ;;  %v1657_v23 = vpop.f32.mrb[45].mxu0  ;;  %v1966_v24 = vld [vmem:[%s3060_s15 + $0x70] sm:$0xff] }
 0x2f5   : > { %v1658_v52 = vadd.f32 %v3022_v46, %v1657_v23  ;;  %v2420_v27 = vpop.f32.mrb[46].mxu0 }
 0x2f6   : > { %v1669_v28 = vadd.f32 %v2420_v27, %v3022_v46  ;;  %v1660_v29 = vpop.f32.mrb[47].mxu0  ;;  %v1702_v7 = vmax.f32 %v1666_v25, 0.0 }
 0x2f7   : > { %v1661_v30 = vadd.f32 %v3022_v46, %v1660_v29  ;;  %v1700_v54 = vmax.f32 %v1658_v52, 0.0  ;;  %v3065_v46 = vld [vmem:[%s3213_s9] ss:$0 sm:$0xff]  ;;  %v1967_v29 = vld [vmem:[%s3060_s15 + $0x78] sm:$0xff] }
 0x2f8   : > { %v1703_v31 = vmax.f32 %v1669_v28, 0.0  ;;  %v1964_v52 = vld [vmem:[%s3060_s15 + $0x60] sm:$0xff] }
 0x2f9   : > { %v1701_v32 = vmax.f32 %v1661_v30, 0.0 }
 0x2fa   : > { %v1719_v45 = vpack.c.bf16 %v1703_v31, %v1702_v7 }
 0x2fb   : > { %v1718_v33 = vpack.c.bf16 %v1701_v32, %v1700_v54  ;;  %v1965_v54 = vld [vmem:[%s3060_s15 + $0x68] sm:$0xff] }
 0x2fd   : > { %2465 = vmatprep.mubr.bf16.mxu0 %v1718_v33 }
 0x2fe   : > { %2466 = vmatmul.mubr.bf16.gmra.mrb[76].mxu0 %v1719_v45 }
 0x361   : > { %v2439_v34 = vpop.f32.mrb[48].mxu0 }
 0x362   : > { %v1834_v36 = vadd.f32 %v2439_v34, %v3065_v46  ;;  %v1825_v37 = vpop.f32.mrb[49].mxu0 }
 0x363   : > { %v1826_v40 = vadd.f32 %v3065_v46, %v1825_v37  ;;  %v2440_v39 = vpop.f32.mrb[50].mxu0 }
 0x364   : > { %v1986_v41 = vmul.f32 %v1954_v47, %v1834_v36  ;;  %v1837_v42 = vadd.f32 %v2440_v39, %v3065_v46  ;;  %v1828_v59 = vpop.f32.mrb[51].mxu0  ;;  %v1970_v36 = vld [vmem:[%s3060_s15 + $0x90] sm:$0xff] }
 0x365   : > { %v1984_v43 = vmul.f32 %v1952_v38, %v1826_v40  ;;  %v1829_v60 = vadd.f32 %v3065_v46, %v1828_v59  ;;  %v1968_v40 = vld [vmem:[%s3060_s15 + $0x80] sm:$0xff] }
 0x366   : > { %2019 = vst.msk [vmem:[%s3074_s21 + $0x10] sm:$0xff] %vm2016_vm4, %v1986_v41  ;;  %v1987_v56 = vmul.f32 %v1955_v57, %v1837_v42  ;;  %v1971_v41 = vld [vmem:[%s3060_s15 + $0x98] sm:$0xff] }
 0x367   : > { %2017 = vst.msk [vmem:[%s3074_s21] sm:$0xff] %vm2016_vm4, %v1984_v43  ;;  %v1985_v61 = vmul.f32 %v1953_v44, %v1829_v60  ;;  %v1969_v43 = vld [vmem:[%s3060_s15 + $0x88] sm:$0xff] }
 0x368   : > { %2020 = vst.msk [vmem:[%s3074_s21 + $0x18] sm:$0xff] %vm2016_vm4, %v1987_v56 }
 0x369   : > { %2018 = vst.msk [vmem:[%s3074_s21 + $0x8] sm:$0xff] %vm2016_vm4, %v1985_v61 }
 0x371   : > { %v2443_v62 = vpop.f32.mrb[52].mxu0 }
 0x372   : > { %v1850_v58 = vadd.f32 %v2443_v62, %v3065_v46  ;;  %v1841_v4 = vpop.f32.mrb[53].mxu0 }
 0x373   : > { %v1842_v6 = vadd.f32 %v3065_v46, %v1841_v4  ;;  %v2444_v5 = vpop.f32.mrb[54].mxu0 }
 0x374   : > { %v1990_v49 = vmul.f32 %v1958_v0, %v1850_v58  ;;  %v1853_v8 = vadd.f32 %v2444_v5, %v3065_v46  ;;  %v1844_v9 = vpop.f32.mrb[55].mxu0  ;;  %v1974_v58 = vld [vmem:[%s3060_s15 + $0xb0] sm:$0xff] }
 0x375   : > { %v1988_v3 = vmul.f32 %v1956_v1, %v1842_v6  ;;  %v1845_v10 = vadd.f32 %v3065_v46, %v1844_v9  ;;  %v1972_v6 = vld [vmem:[%s3060_s15 + $0xa0] sm:$0xff] }
 0x376   : > { %2023 = vst.msk [vmem:[%s3074_s21 + $0x30] sm:$0xff] %vm2016_vm4, %v1990_v49  ;;  %v1991_v11 = vmul.f32 %v1959_v35, %v1853_v8  ;;  %v1975_v49 = vld [vmem:[%s3060_s15 + $0xb8] sm:$0xff] }
 0x377   : > { %2021 = vst.msk [vmem:[%s3074_s21 + $0x20] sm:$0xff] %vm2016_vm4, %v1988_v3  ;;  %v1989_v12 = vmul.f32 %v1957_v51, %v1845_v10  ;;  %v1973_v3 = vld [vmem:[%s3060_s15 + $0xa8] sm:$0xff] }
 0x378   : > { %2024 = vst.msk [vmem:[%s3074_s21 + $0x38] sm:$0xff] %vm2016_vm4, %v1991_v11 }
 0x379   : > { %2022 = vst.msk [vmem:[%s3074_s21 + $0x28] sm:$0xff] %vm2016_vm4, %v1989_v12 }
 0x381   : > { %v2447_v13 = vpop.f32.mrb[56].mxu0 }
 0x382   : > { %v1866_v14 = vadd.f32 %v2447_v13, %v3065_v46  ;;  %v1857_v48 = vpop.f32.mrb[57].mxu0 }
 0x383   : > { %v1858_v26 = vadd.f32 %v3065_v46, %v1857_v48  ;;  %v2448_v50 = vpop.f32.mrb[58].mxu0 }
 0x384   : > { %v1994_v16 = vmul.f32 %v1962_v20, %v1866_v14  ;;  %v1869_v17 = vadd.f32 %v2448_v50, %v3065_v46  ;;  %v1860_v19 = vpop.f32.mrb[59].mxu0  ;;  %v1978_v14 = vld [vmem:[%s3060_s15 + $0xd0] sm:$0xff] }
 0x385   : > { %v1992_v21 = vmul.f32 %v1960_v63, %v1858_v26  ;;  %v1861_v22 = vadd.f32 %v3065_v46, %v1860_v19  ;;  %v1976_v26 = vld [vmem:[%s3060_s15 + $0xc0] sm:$0xff] }
 0x386   : > { %2027 = vst.msk [vmem:[%s3074_s21 + $0x50] sm:$0xff] %vm2016_vm4, %v1994_v16  ;;  %v1995_v2 = vmul.f32 %v1963_v15, %v1869_v17  ;;  %v1979_v16 = vld [vmem:[%s3060_s15 + $0xd8] sm:$0xff] }
 0x387   : > { %2025 = vst.msk [vmem:[%s3074_s21 + $0x40] sm:$0xff] %vm2016_vm4, %v1992_v21  ;;  %v1993_v55 = vmul.f32 %v1961_v53, %v1861_v22  ;;  %v1977_v21 = vld [vmem:[%s3060_s15 + $0xc8] sm:$0xff] }
 0x388   : > { %2028 = vst.msk [vmem:[%s3074_s21 + $0x58] sm:$0xff] %vm2016_vm4, %v1995_v2 }
 0x389   : > { %2026 = vst.msk [vmem:[%s3074_s21 + $0x48] sm:$0xff] %vm2016_vm4, %v1993_v55 }
 0x391   : > { %v2451_v18 = vpop.f32.mrb[60].mxu0 }
 0x392   : > { %v1882_v25 = vadd.f32 %v2451_v18, %v3065_v46  ;;  %v1873_v23 = vpop.f32.mrb[61].mxu0 }
 0x393   : > { %v1874_v27 = vadd.f32 %v3065_v46, %v1873_v23  ;;  %v2452_v28 = vpop.f32.mrb[62].mxu0 }
 0x394   : > { %v1998_v30 = vmul.f32 %v1966_v24, %v1882_v25  ;;  %v1885_v7 = vadd.f32 %v2452_v28, %v3065_v46  ;;  %v1876_v31 = vpop.f32.mrb[63].mxu0  ;;  %v1982_v25 = vld [vmem:[%s3060_s15 + $0xf0] sm:$0xff] }
 0x395   : > { %v1996_v32 = vmul.f32 %v1964_v52, %v1874_v27  ;;  %v1877_v45 = vadd.f32 %v3065_v46, %v1876_v31  ;;  %v1980_v27 = vld [vmem:[%s3060_s15 + $0xe0] sm:$0xff] }
 0x396   : > { %2031 = vst.msk [vmem:[%s3074_s21 + $0x70] sm:$0xff] %vm2016_vm4, %v1998_v30  ;;  %v1999_v33 = vmul.f32 %v1967_v29, %v1885_v7  ;;  %v1983_v30 = vld [vmem:[%s3060_s15 + $0xf8] sm:$0xff] }
 0x397   : > { %2029 = vst.msk [vmem:[%s3074_s21 + $0x60] sm:$0xff] %vm2016_vm4, %v1996_v32  ;;  %v1997_v34 = vmul.f32 %v1965_v54, %v1877_v45  ;;  %v1981_v32 = vld [vmem:[%s3060_s15 + $0xe8] sm:$0xff] }
 0x398   : > { %2032 = vst.msk [vmem:[%s3074_s21 + $0x78] sm:$0xff] %vm2016_vm4, %v1999_v33 }
 0x399   : > { %2030 = vst.msk [vmem:[%s3074_s21 + $0x68] sm:$0xff] %vm2016_vm4, %v1997_v34 }
 0x3a1   : > { %v2455_v47 = vpop.f32.mrb[64].mxu0 }
 0x3a2   : > { %v1898_v37 = vadd.f32 %v2455_v47, %v3065_v46  ;;  %v1889_v38 = vpop.f32.mrb[65].mxu0 }
 0x3a3   : > { %v1890_v39 = vadd.f32 %v3065_v46, %v1889_v38  ;;  %v2456_v57 = vpop.f32.mrb[66].mxu0 }
 0x3a4   : > { %v2002_v42 = vmul.f32 %v1970_v36, %v1898_v37  ;;  %v1901_v59 = vadd.f32 %v2456_v57, %v3065_v46  ;;  %v1892_v44 = vpop.f32.mrb[67].mxu0 }
 0x3a5   : > { %v2000_v60 = vmul.f32 %v1968_v40, %v1890_v39  ;;  %v1893_v56 = vadd.f32 %v3065_v46, %v1892_v44 }
 0x3a6   : > { %2035 = vst.msk [vmem:[%s3074_s21 + $0x90] sm:$0xff] %vm2016_vm4, %v2002_v42  ;;  %v2003_v61 = vmul.f32 %v1971_v41, %v1901_v59 }
 0x3a7   : > { %2033 = vst.msk [vmem:[%s3074_s21 + $0x80] sm:$0xff] %vm2016_vm4, %v2000_v60  ;;  %v2001_v62 = vmul.f32 %v1969_v43, %v1893_v56 }
 0x3a8   : > { %2036 = vst.msk [vmem:[%s3074_s21 + $0x98] sm:$0xff] %vm2016_vm4, %v2003_v61 }
 0x3a9   : > { %2034 = vst.msk [vmem:[%s3074_s21 + $0x88] sm:$0xff] %vm2016_vm4, %v2001_v62 }
 0x3b1   : > { %v2459_v0 = vpop.f32.mrb[68].mxu0 }
 0x3b2   : > { %v1914_v4 = vadd.f32 %v2459_v0, %v3065_v46  ;;  %v1905_v1 = vpop.f32.mrb[69].mxu0 }
 0x3b3   : > { %v1906_v5 = vadd.f32 %v3065_v46, %v1905_v1  ;;  %v2460_v35 = vpop.f32.mrb[70].mxu0 }
 0x3b4   : > { %v2006_v8 = vmul.f32 %v1974_v58, %v1914_v4  ;;  %v1917_v9 = vadd.f32 %v2460_v35, %v3065_v46  ;;  %v1908_v51 = vpop.f32.mrb[71].mxu0 }
 0x3b5   : > { %v2004_v10 = vmul.f32 %v1972_v6, %v1906_v5  ;;  %v1909_v11 = vadd.f32 %v3065_v46, %v1908_v51 }
 0x3b6   : > { %2039 = vst.msk [vmem:[%s3074_s21 + $0xb0] sm:$0xff] %vm2016_vm4, %v2006_v8  ;;  %v2007_v12 = vmul.f32 %v1975_v49, %v1917_v9 }
 0x3b7   : > { %2037 = vst.msk [vmem:[%s3074_s21 + $0xa0] sm:$0xff] %vm2016_vm4, %v2004_v10  ;;  %v2005_v13 = vmul.f32 %v1973_v3, %v1909_v11 }
 0x3b8   : > { %2040 = vst.msk [vmem:[%s3074_s21 + $0xb8] sm:$0xff] %vm2016_vm4, %v2007_v12 }
 0x3b9   : > { %2038 = vst.msk [vmem:[%s3074_s21 + $0xa8] sm:$0xff] %vm2016_vm4, %v2005_v13 }
 0x3c1   : > { %v2463_v20 = vpop.f32.mrb[72].mxu0 }
 0x3c2   : > { %v1930_v48 = vadd.f32 %v2463_v20, %v3065_v46  ;;  %v1921_v63 = vpop.f32.mrb[73].mxu0 }
 0x3c3   : > { %v1922_v50 = vadd.f32 %v3065_v46, %v1921_v63  ;;  %v2464_v15 = vpop.f32.mrb[74].mxu0 }
 0x3c4   : > { %v2010_v17 = vmul.f32 %v1978_v14, %v1930_v48  ;;  %v1933_v19 = vadd.f32 %v2464_v15, %v3065_v46  ;;  %v1924_v53 = vpop.f32.mrb[75].mxu0 }
 0x3c5   : > { %v2008_v22 = vmul.f32 %v1976_v26, %v1922_v50  ;;  %v1925_v2 = vadd.f32 %v3065_v46, %v1924_v53 }
 0x3c6   : > { %2043 = vst.msk [vmem:[%s3074_s21 + $0xd0] sm:$0xff] %vm2016_vm4, %v2010_v17  ;;  %v2011_v55 = vmul.f32 %v1979_v16, %v1933_v19 }
 0x3c7   : > { %2041 = vst.msk [vmem:[%s3074_s21 + $0xc0] sm:$0xff] %vm2016_vm4, %v2008_v22  ;;  %v2009_v18 = vmul.f32 %v1977_v21, %v1925_v2 }
 0x3c8   : > { %2044 = vst.msk [vmem:[%s3074_s21 + $0xd8] sm:$0xff] %vm2016_vm4, %v2011_v55 }
 0x3c9   : > { %2042 = vst.msk [vmem:[%s3074_s21 + $0xc8] sm:$0xff] %vm2016_vm4, %v2009_v18 }
 0x3d1   : > { %v2467_v24 = vpop.f32.mrb[76].mxu0 }
 0x3d2   : > { %v1946_v23 = vadd.f32 %v2467_v24, %v3065_v46  ;;  %v1937_v52 = vpop.f32.mrb[77].mxu0 }
 0x3d3   : > { %v1938_v28 = vadd.f32 %v3065_v46, %v1937_v52  ;;  %v2468_v29 = vpop.f32.mrb[78].mxu0 }
 0x3d4   : > { %v2014_v7 = vmul.f32 %v1982_v25, %v1946_v23  ;;  %v1949_v31 = vadd.f32 %v2468_v29, %v3065_v46  ;;  %v1940_v54 = vpop.f32.mrb[79].mxu0 }
 0x3d5   : > { %v2012_v45 = vmul.f32 %v1980_v27, %v1938_v28  ;;  %v1941_v33 = vadd.f32 %v3065_v46, %v1940_v54 }
 0x3d6   : > { %2047 = vst.msk [vmem:[%s3074_s21 + $0xf0] sm:$0xff] %vm2016_vm4, %v2014_v7  ;;  %v2015_v34 = vmul.f32 %v1983_v30, %v1949_v31 }
 0x3d7   : > { %2045 = vst.msk [vmem:[%s3074_s21 + $0xe0] sm:$0xff] %vm2016_vm4, %v2012_v45  ;;  %v2013_v47 = vmul.f32 %v1981_v32, %v1941_v33 }
 0x3d8   : > { %2048 = vst.msk [vmem:[%s3074_s21 + $0xf8] sm:$0xff] %vm2016_vm4, %v2015_v34 }
 0x3d9   : > { %2046 = vst.msk [vmem:[%s3074_s21 + $0xe8] sm:$0xff] %vm2016_vm4, %v2013_v47 }
 0x3da PF: > { %s20_s13 = sadd.s32 1, %s2566_s13  }
 0x3db   : > { %p17_p4 = scmp.ge.s32.totalorder %s20_s13, 6  }
 0x3dd   :  { %19 = sbr.rel (!%p17_p4) target bundleno = 1 (0x1), region = 96 }

</bundles_post_ra>
